<compile_context>
chip_gen: v6e
topology: v6e:2x2x1
jax: 0.10.0
libtpu: 0.0.40
codegen_flags: <defaults>
</compile_context>

<pallas_src>
import functools

import jax
import jax.numpy as jnp
from jax import lax
from jax.experimental import pallas as pl
from jax.experimental.pallas import tpu as pltpu


# ---------------------------------------------------------------------------
# Pallas kernel 1: pairwise squared distances (KNN prep)
# ---------------------------------------------------------------------------

def _sqdist_kernel(src_ref, dstT_ref, ssq_ref, dsq_ref, out_ref):
    # src: [S, 3], dstT: [3, nt], ssq: [S, 1], dsq: [1, nt] -> out: [S, nt]
    d = -2.0 * jnp.dot(src_ref[...], dstT_ref[...],
                       preferred_element_type=jnp.float32)
    out_ref[...] = d + ssq_ref[...] + dsq_ref[...]


def square_distance(src, dst):
    """src: [B,S,3], dst: [B,N,3] -> [B,S,N] squared distances (Pallas)."""
    # TODO(synk): fuse a running per-row top-K (values+indices in VMEM scratch
    # across the N-tile axis) into this kernel so the full [B,S,N] matrix is
    # never written to HBM.
    B, S, C = src.shape
    _, N, _ = dst.shape
    # Always tile the N axis lane-dense: pad N to a multiple of 128 instead of
    # falling back to one giant [S, N] block (keeps unmasked stores, keeps the
    # block inside scoped VMEM, and keeps pipelining for any N).
    n_pad = max(128, ((N + 127) // 128) * 128)
    if n_pad != N:
        dst = jnp.pad(dst, ((0, 0), (0, n_pad - N), (0, 0)))
    nt = 512 if n_pad % 512 == 0 else (256 if n_pad % 256 == 0 else 128)

    dstT = jnp.transpose(dst, (0, 2, 1))                 # [B, 3, n_pad] (tiny)
    ssq = jnp.sum(src * src, axis=-1, keepdims=True)     # [B, S, 1]
    dsq = jnp.sum(dst * dst, axis=-1)[:, None, :]        # [B, 1, n_pad]

    out = pl.pallas_call(
        _sqdist_kernel,
        out_shape=jax.ShapeDtypeStruct((B, S, n_pad), jnp.float32),
        grid=(B, n_pad // nt),
        in_specs=[
            pl.BlockSpec((None, S, C), lambda b, n: (b, 0, 0)),
            pl.BlockSpec((None, C, nt), lambda b, n: (b, 0, n)),
            pl.BlockSpec((None, S, 1), lambda b, n: (b, 0, 0)),
            pl.BlockSpec((None, 1, nt), lambda b, n: (b, 0, n)),
        ],
        out_specs=pl.BlockSpec((None, S, nt), lambda b, n: (b, 0, n)),
        compiler_params=pltpu.CompilerParams(
            dimension_semantics=("parallel", "parallel")),
    )(src, dstT, ssq, dsq)
    return out[:, :, :N]   # drop padded columns before neighbor selection


# ---------------------------------------------------------------------------
# Pallas kernel 2: fused MLP (+ running max over K) -> Attention -> CSA
# ---------------------------------------------------------------------------

def _fused_tail_kernel(gp_ref, gcp_ref, gn_ref, nx_ref,
                       w1a_ref, w1bc_ref, w1cc_ref, b1_ref, w2_ref, b2_ref,
                       wa1t_ref, bat_ref, wa2t_ref, wqkt_ref, wvt_ref,
                       feat_out_ref, pos_out_ref,
                       feat_acc, pos_acc):
    # Grid = (B, K).  Per step this kernel sees ONE neighbor slice:
    #   gp  [S, D]   grouped csa_f features          (bf16)
    #   gcp [S, D]   grouped csa_p features          (bf16)
    #   gn  [S, 3]   grouped_xyz - center            (f32)
    #   nx  [S, 3]   sampled centers (new_xyz)       (f32)
    # Stacked weights: branch index 0 = feature, 1 = position.
    k = pl.program_id(1)
    nk = pl.num_programs(1)
    H0 = b1_ref.shape[-1]
    H1 = b2_ref.shape[-1]

    # Shared xyz_norm/center partial products for BOTH branches in one
    # widened-N matmul each: [S,3] @ [3, 2*H0].
    shared = jnp.dot(gn_ref[...], w1bc_ref[...],
                     preferred_element_type=jnp.float32)
    shared = shared + jnp.dot(nx_ref[...], w1cc_ref[...],
                              preferred_element_type=jnp.float32)

    def mlp(x_ref, idx):
        # Two fused 1x1 convs (BN folded into W, bias + ReLU in f32); the
        # [.., Cin+6] concat is never materialized.
        h = jnp.dot(x_ref[...], w1a_ref[idx],
                    preferred_element_type=jnp.float32)
        h = jnp.maximum(h + shared[:, idx * H0:(idx + 1) * H0] + b1_ref[idx],
                        0.0)
        h = jnp.dot(h.astype(jnp.bfloat16), w2_ref[idx],
                    preferred_element_type=jnp.float32)
        return jnp.maximum(h + b2_ref[idx], 0.0)          # [S, H1]

    hf = mlp(gp_ref, 0)
    hp = mlp(gcp_ref, 1)

    @pl.when(k == 0)
    def _init():
        feat_acc[...] = jnp.full_like(feat_acc, -jnp.inf)
        pos_acc[...] = jnp.full_like(pos_acc, -jnp.inf)

    # Running max over the K (neighbor) grid axis.
    feat_acc[...] = jnp.maximum(feat_acc[...], hf)
    pos_acc[...] = jnp.maximum(pos_acc[...], hp)

    @pl.when(k == nk - 1)
    def _finalize():
        # Channel-first from here on: [H1, S] keeps S on the lane axis so all
        # CSA matmuls are lane-dense and outputs are written with no transpose.
        f_cf = feat_acc[...].T
        p_cf = pos_acc[...].T

        def chan_attention(x_cf, idx):
            # Attention: gate = sigmoid(conv(relu(bn(conv(sum(x @ x^T, -1)))))).
            colsum = jnp.sum(x_cf, axis=0, keepdims=True)          # [1, S]
            att = jnp.sum(x_cf * colsum, axis=1, keepdims=True)    # [H1, 1]
            t = jnp.dot(wa1t_ref[idx], att,
                        preferred_element_type=jnp.float32)
            t = jnp.maximum(t + bat_ref[idx], 0.0)
            t = jnp.dot(wa2t_ref[idx], t,
                        preferred_element_type=jnp.float32)
            return x_cf * jax.nn.sigmoid(t)

        f_cf = chan_attention(f_cf, 0)     # fa2 on feature
        p_cf = chan_attention(p_cf, 1)     # fa1 on position

        def csa(f, p, idx):
            # CSA_Layer(feature=f, position=p); q/k projections fused into one
            # [2*H1, H1] matmul (same LHS p), all outputs [*, S] lane-dense.
            qk = jnp.dot(wqkt_ref[idx], p,
                         preferred_element_type=jnp.float32)       # [2H1, S]
            q, kk = qk[:H1], qk[H1:]
            v = jnp.dot(wvt_ref[idx], f,
                        preferred_element_type=jnp.float32)        # [H1, S]
            energy = jnp.sum(q, axis=0, keepdims=True) * kk        # [H1, S]
            energy = energy / (1e-9 + jnp.sum(energy, axis=0, keepdims=True))
            e = jnp.exp(energy - jnp.max(energy, axis=0, keepdims=True))
            attn = e / jnp.sum(e, axis=0, keepdims=True)           # softmax (C)
            return attn * v + f

        feat_out_ref[...] = csa(f_cf, p_cf, 0)
        pos_out_ref[...] = csa(p_cf, f_cf, 1)


def _full_spec(a):
    zeros = (0,) * a.ndim
    return pl.BlockSpec(a.shape, lambda b, k: zeros)


def _bk_spec(a):
    tail = (0,) * (a.ndim - 2)
    return pl.BlockSpec((None, None) + a.shape[2:],
                        lambda b, k: (b, k) + tail)


def fused_tail(gp, gcp, gn, nx, fp):
    """One pallas_call over a (B, K) grid for MLP+max -> Attention -> CSA.

    B is "parallel" (feeds both v7x TensorCores when B >= 2); K is the
    "arbitrary" reduction axis with VMEM running-max scratch.  Intermediates
    never touch HBM; outputs are kernel-native channel-first [B, H1, S].
    """
    B, K, S, _ = gp.shape
    H1 = fp["b2"].shape[-1]

    operands = (gp, gcp, gn, nx,
                fp["w1a"], fp["w1bc"], fp["w1cc"], fp["b1"], fp["w2"],
                fp["b2"], fp["wa1t"], fp["bat"], fp["wa2t"],
                fp["wqkt"], fp["wvt"])
    in_specs = ([_bk_spec(gp), _bk_spec(gcp), _bk_spec(gn),
                 pl.BlockSpec((None, S, 3), lambda b, k: (b, 0, 0))]
                + [_full_spec(a) for a in operands[4:]])
    out_spec = pl.BlockSpec((None, H1, S), lambda b, k: (b, 0, 0))

    return pl.pallas_call(
        _fused_tail_kernel,
        out_shape=(jax.ShapeDtypeStruct((B, H1, S), jnp.float32),
                   jax.ShapeDtypeStruct((B, H1, S), jnp.float32)),
        grid=(B, K),
        in_specs=in_specs,
        out_specs=(out_spec, out_spec),
        scratch_shapes=[pltpu.VMEM((S, H1), jnp.float32),
                        pltpu.VMEM((S, H1), jnp.float32)],
        compiler_params=pltpu.CompilerParams(
            dimension_semantics=("parallel", "arbitrary")),
    )(*operands)


# ---------------------------------------------------------------------------
# Plain-JAX glue (data-dependent sampling / gathers)
# ---------------------------------------------------------------------------

def farthest_point_sample(xyz, npoint, key):
    # TODO(synk): inherently sequential, data-dependent argmax loop -> plain JAX.
    B, N, _ = xyz.shape
    farthest0 = jax.random.randint(key, (B,), 0, N, dtype=jnp.int32)
    centroids0 = jnp.zeros((B, npoint), jnp.int32)
    distance0 = jnp.full((B, N), 1e10, jnp.float32)
    batch = jnp.arange(B)

    def body(i, carry):
        centroids, distance, farthest = carry
        centroids = centroids.at[:, i].set(farthest)
        centroid = xyz[batch, farthest][:, None, :]        # [B, 1, 3]
        dist = jnp.sum((xyz - centroid) ** 2, axis=-1)
        distance = jnp.minimum(distance, dist)
        farthest = jnp.argmax(distance, axis=-1).astype(jnp.int32)
        return centroids, distance, farthest

    centroids, _, _ = lax.fori_loop(0, npoint, body,
                                    (centroids0, distance0, farthest0))
    return centroids


def index_points(points, idx):
    # points: [B, N, C]; idx: [B, S] -> [B, S, C]
    return jnp.take_along_axis(points, idx[..., None], axis=1)


def gather_grouped(points, flat_idx, K, S):
    # points: [B, N, C]; flat_idx: [B, K*S] (k-major) -> [B, K, S, C]
    # TODO(synk): could be moved in-kernel (PrefetchScalarGridSpec + manual row
    # DMA) to avoid the HBM round-trip of the gathered arrays.
    B = points.shape[0]
    g = jnp.take_along_axis(points, flat_idx[..., None], axis=1)
    return g.reshape(B, K, S, points.shape[-1])


# ---------------------------------------------------------------------------
# Parameters (deterministic synthetic init) + BN folding / stacking
# ---------------------------------------------------------------------------

def init_params(key, in_channel, mlp):
    cin = in_channel + 6
    h0, h1 = mlp
    keys = iter(jax.random.split(key, 32))

    def conv_w(k, cin_, cout):
        # stored transposed: [in, out] so point-major code computes x @ W
        return 0.1 * jax.random.normal(k, (cin_, cout), jnp.float32)

    def bn(k, c):
        k1, k2, k3, k4 = jax.random.split(k, 4)
        gamma = 1.0 + 0.1 * jax.random.normal(k1, (c,))
        beta = 0.1 * jax.random.normal(k2, (c,))
        mean = 0.1 * jax.random.normal(k3, (c,))
        var = 1.0 + 0.1 * jax.random.uniform(k4, (c,))
        scale = gamma / jnp.sqrt(var + 1e-5)
        bias = beta - mean * scale
        return (scale.reshape(1, c).astype(jnp.float32),
                bias.reshape(1, c).astype(jnp.float32))

    def mlp_branch():
        w1 = conv_w(next(keys), cin, h0)
        s1, b1 = bn(next(keys), h0)
        w2 = conv_w(next(keys), h0, h1)
        s2, b2 = bn(next(keys), h1)
        return dict(w1=w1, s1=s1, b1=b1, w2=w2, s2=s2, b2=b2)

    def attn_branch():
        c4 = h1 // 4
        w1 = conv_w(next(keys), h1, c4)
        s1, b1 = bn(next(keys), c4)
        w2 = conv_w(next(keys), c4, h1)
        return dict(w1=w1, s1=s1, b1=b1, w2=w2)

    def csa_branch():
        return dict(wq=conv_w(next(keys), h1, h1),
                    wk=conv_w(next(keys), h1, h1),
                    wv=conv_w(next(keys), h1, h1))

    return dict(feature=mlp_branch(), position=mlp_branch(),
                fa1=attn_branch(), fa2=attn_branch(),
                csa_feature=csa_branch(), csa_position=csa_branch())


def prepare_params(params):
    """Fold BN scales into conv weights, split W1 into channel blocks, stack
    the feature(0)/position(1) branches, and pre-transpose the channel-first
    (Attention / CSA) weights for the fused kernel."""
    def mlp(p):
        w1 = p["w1"] * p["s1"]                     # [Cin, H0]
        w2 = p["w2"] * p["s2"]                     # [H0, H1]
        d = w1.shape[0] - 6
        return (w1[:d], w1[d:d + 3], w1[d + 3:d + 6], p["b1"], w2, p["b2"])

    fm = mlp(params["feature"])
    pm = mlp(params["position"])

    def attn_t(p):
        # channel-first: t = Wa2^T @ relu(Wa1s^T @ att + b1^T)
        w1s = p["w1"] * p["s1"]
        return w1s.T, p["b1"].T, p["w2"].T

    af = attn_t(params["fa2"])   # applied to feature
    ap = attn_t(params["fa1"])   # applied to position

    def csa_t(p):
        return jnp.concatenate([p["wq"].T, p["wk"].T], axis=0), p["wv"].T

    cf = csa_t(params["csa_feature"])
    cp = csa_t(params["csa_position"])

    return dict(
        w1a=jnp.stack([fm[0], pm[0]]).astype(jnp.bfloat16),     # [2, D, H0]
        w1bc=jnp.concatenate([fm[1], pm[1]], axis=1),           # [3, 2*H0]
        w1cc=jnp.concatenate([fm[2], pm[2]], axis=1),           # [3, 2*H0]
        b1=jnp.stack([fm[3], pm[3]]),                           # [2, 1, H0]
        w2=jnp.stack([fm[4], pm[4]]).astype(jnp.bfloat16),      # [2, H0, H1]
        b2=jnp.stack([fm[5], pm[5]]),                           # [2, 1, H1]
        wa1t=jnp.stack([af[0], ap[0]]),                         # [2, H1/4, H1]
        bat=jnp.stack([af[1], ap[1]]),                          # [2, H1/4, 1]
        wa2t=jnp.stack([af[2], ap[2]]),                         # [2, H1, H1/4]
        wqkt=jnp.stack([cf[0], cp[0]]),                         # [2, 2*H1, H1]
        wvt=jnp.stack([cf[1], cp[1]]),                          # [2, H1, H1]
    )


# ---------------------------------------------------------------------------
# Full forward
# ---------------------------------------------------------------------------

def csanet_set_abstraction(params, xyz_bcn, csa_f_bdn, csa_p_bdn, fps_key, *,
                           npoint, nsample):
    xyz = jnp.transpose(xyz_bcn, (0, 2, 1))       # [B, N, 3]
    points = jnp.transpose(csa_f_bdn, (0, 2, 1))  # [B, N, D]
    csa_p = jnp.transpose(csa_p_bdn, (0, 2, 1))   # [B, N, D]
    B, N, _ = xyz.shape
    S, K = npoint, nsample

    fps_idx = farthest_point_sample(xyz, S, fps_key)        # [B, S]
    new_xyz = index_points(xyz, fps_idx)                    # [B, S, 3]

    dists = square_distance(new_xyz, xyz)                   # Pallas, [B, S, N]
    if N > 2048:
        # Cheaper-than-sort neighbor selection for large point counts.
        _, idx = lax.approx_max_k(-dists, K, recall_target=0.95)
    else:
        _, idx = lax.top_k(-dists, K)                       # [B, S, K]
    idx_ks = jnp.swapaxes(idx, 1, 2)                        # [B, K, S]
    flat_idx = idx_ks.reshape(B, K * S)                     # k-major rows

    gp = gather_grouped(points, flat_idx, K, S)             # [B, K, S, D]
    gx = gather_grouped(xyz, flat_idx, K, S)                # [B, K, S, 3]
    gcp = gather_grouped(csa_p, flat_idx, K, S)             # [B, K, S, D]
    gn = gx - new_xyz[:, None, :, :]                        # [B, K, S, 3]

    fp = prepare_params(params)
    csa_feature, csa_position = fused_tail(
        gp.astype(jnp.bfloat16), gcp.astype(jnp.bfloat16), gn, new_xyz, fp)

    return (jnp.transpose(new_xyz, (0, 2, 1)),   # [B, 3, S]
            csa_feature,                          # [B, H1, S] (kernel-native NCW)
            csa_position,                         # [B, H1, S]
            fps_idx)                              # [B, S]


if __name__ == "__main__":
    key = jax.random.PRNGKey(0)
    k_xyz, k_f, k_p, k_params, k_fps = jax.random.split(key, 5)

    B, N, D = 2, 16, 4          # batch, points, feature channels
    npoint, nsample = 8, 4      # sampled points, knn neighbors
    mlp = (16, 32)

    xyz = jax.random.normal(k_xyz, (B, 3, N), jnp.float32)
    csa_f = jax.random.normal(k_f, (B, D, N), jnp.float32)
    csa_p = jax.random.normal(k_p, (B, D, N), jnp.float32)

    params = init_params(k_params, in_channel=D, mlp=mlp)

    fwd = jax.jit(functools.partial(csanet_set_abstraction,
                                    npoint=npoint, nsample=nsample))
    new_xyz, csa_feature, csa_position, fps_idx = fwd(params, xyz, csa_f,
                                                      csa_p, k_fps)
    jax.block_until_ready((new_xyz, csa_feature, csa_position, fps_idx))

    assert new_xyz.shape == (B, 3, npoint)
    assert csa_feature.shape == (B, mlp[1], npoint)
    assert csa_position.shape == (B, mlp[1], npoint)
    assert fps_idx.shape == (B, npoint)
    print("KERNEL_OK")
</pallas_src>

<mosaic_0001>
module attributes {stable_mosaic.version = 11 : i64} {
  func.func @_sqdist_kernel(%arg0: i32, %arg1: i32, %arg2: memref<1x8x3xf32, #tpu.memory_space<vmem>>, %arg3: memref<1x3x128xf32, #tpu.memory_space<vmem>>, %arg4: memref<1x8x1xf32, #tpu.memory_space<vmem>>, %arg5: memref<1x1x128xf32, #tpu.memory_space<vmem>>, %arg6: memref<1x8x128xf32, #tpu.memory_space<vmem>>) attributes {dimension_semantics = [#tpu.dimension_semantics<parallel>, #tpu.dimension_semantics<parallel>], iteration_bounds = array<i64: 2, 1>, scalar_prefetch = 0 : i64, scratch_operands = 0 : i64, tpu.core_type = #tpu.core_type<tc>, window_params = [{transform_indices = @transform_0, window_bounds = array<i64: 1, 8, 3>}, {transform_indices = @transform_1, window_bounds = array<i64: 1, 3, 128>}, {transform_indices = @transform_2, window_bounds = array<i64: 1, 8, 1>}, {transform_indices = @transform_3, window_bounds = array<i64: 1, 1, 128>}, {transform_indices = @transform_4, window_bounds = array<i64: 1, 8, 128>}]} {
    %c0 = arith.constant 0 : index
    %c0_0 = arith.constant 0 : index
    %c0_1 = arith.constant 0 : index
    %0 = vector.load %arg2[%c0, %c0_0, %c0_1] : memref<1x8x3xf32, #tpu.memory_space<vmem>>, vector<1x8x3xf32>
    %1 = vector.shape_cast %0 : vector<1x8x3xf32> to vector<8x3xf32>
    %c0_2 = arith.constant 0 : index
    %c0_3 = arith.constant 0 : index
    %c0_4 = arith.constant 0 : index
    %2 = vector.load %arg3[%c0_2, %c0_3, %c0_4] : memref<1x3x128xf32, #tpu.memory_space<vmem>>, vector<1x3x128xf32>
    %3 = vector.shape_cast %2 : vector<1x3x128xf32> to vector<3x128xf32>
    %cst = arith.constant dense<0.000000e+00> : vector<8x128xf32>
    %4 = tpu.matmul %1, %3, %cst {dimension_numbers = #tpu.dot_dimension_numbers<[1], [0], [0], [1], [0, 0, 1, 1], [], []>} : vector<8x3xf32>, vector<3x128xf32>, vector<8x128xf32> -> vector<8x128xf32>
    %cst_5 = arith.constant -2.000000e+00 : f32
    %5 = vector.broadcast %cst_5 : f32 to vector<8x128xf32>
    %6 = arith.mulf %5, %4 : vector<8x128xf32>
    %c0_6 = arith.constant 0 : index
    %c0_7 = arith.constant 0 : index
    %c0_8 = arith.constant 0 : index
    %7 = vector.load %arg4[%c0_6, %c0_7, %c0_8] : memref<1x8x1xf32, #tpu.memory_space<vmem>>, vector<1x8x1xf32>
    %8 = vector.shape_cast %7 : vector<1x8x1xf32> to vector<8x1xf32>
    %9 = vector.broadcast %8 : vector<8x1xf32> to vector<8x128xf32>
    %10 = arith.addf %6, %9 : vector<8x128xf32>
    %c0_9 = arith.constant 0 : index
    %c0_10 = arith.constant 0 : index
    %c0_11 = arith.constant 0 : index
    %11 = vector.load %arg5[%c0_9, %c0_10, %c0_11] : memref<1x1x128xf32, #tpu.memory_space<vmem>>, vector<1x1x128xf32>
    %12 = vector.shape_cast %11 : vector<1x1x128xf32> to vector<1x128xf32>
    %13 = vector.broadcast %12 : vector<1x128xf32> to vector<8x128xf32>
    %14 = arith.addf %10, %13 : vector<8x128xf32>
    %c0_12 = arith.constant 0 : index
    %c0_13 = arith.constant 0 : index
    %c0_14 = arith.constant 0 : index
    %15 = vector.load %arg6[%c0_12, %c0_13, %c0_14] : memref<1x8x128xf32, #tpu.memory_space<vmem>>, vector<1x8x128xf32>
    %16 = vector.shape_cast %15 : vector<1x8x128xf32> to vector<8x128xf32>
    %17 = vector.shape_cast %14 : vector<8x128xf32> to vector<1x8x128xf32>
    tpu.vector_store %arg6[%c0_12, %c0_13, %c0_14], %17 {strides = array<i32>} : memref<1x8x128xf32, #tpu.memory_space<vmem>>, vector<1x8x128xf32>,
    return
  }
  func.func @transform_0(%arg0: i32, %arg1: i32) -> (i32, i32, i32) {
    %c0_i32 = arith.constant 0 : i32
    %c0_i32_0 = arith.constant 0 : i32
    %c0_i32_1 = arith.constant 0 : i32
    return %arg0, %c0_i32, %c0_i32_0 : i32, i32, i32
  }
  func.func @transform_1(%arg0: i32, %arg1: i32) -> (i32, i32, i32) {
    %c0_i32 = arith.constant 0 : i32
    %c0_i32_0 = arith.constant 0 : i32
    return %arg0, %c0_i32, %arg1 : i32, i32, i32
  }
  func.func @transform_2(%arg0: i32, %arg1: i32) -> (i32, i32, i32) {
    %c0_i32 = arith.constant 0 : i32
    %c0_i32_0 = arith.constant 0 : i32
    %c0_i32_1 = arith.constant 0 : i32
    return %arg0, %c0_i32, %c0_i32_0 : i32, i32, i32
  }
  func.func @transform_3(%arg0: i32, %arg1: i32) -> (i32, i32, i32) {
    %c0_i32 = arith.constant 0 : i32
    %c0_i32_0 = arith.constant 0 : i32
    return %arg0, %c0_i32, %arg1 : i32, i32, i32
  }
  func.func @transform_4(%arg0: i32, %arg1: i32) -> (i32, i32, i32) {
    %c0_i32 = arith.constant 0 : i32
    %c0_i32_0 = arith.constant 0 : i32
    return %arg0, %c0_i32, %arg1 : i32, i32, i32
  }
}

module attributes {stable_mosaic.version = 11 : i64} {
  func.func @_fused_tail_kernel(%arg0: i32, %arg1: i32, %arg2: memref<1x1x8x4xbf16, #tpu.memory_space<vmem>>, %arg3: memref<1x1x8x4xbf16, #tpu.memory_space<vmem>>, %arg4: memref<1x1x8x3xf32, #tpu.memory_space<vmem>>, %arg5: memref<1x8x3xf32, #tpu.memory_space<vmem>>, %arg6: memref<2x4x16xbf16, #tpu.memory_space<vmem>>, %arg7: memref<3x32xf32, #tpu.memory_space<vmem>>, %arg8: memref<3x32xf32, #tpu.memory_space<vmem>>, %arg9: memref<2x1x16xf32, #tpu.memory_space<vmem>>, %arg10: memref<2x16x32xbf16, #tpu.memory_space<vmem>>, %arg11: memref<2x1x32xf32, #tpu.memory_space<vmem>>, %arg12: memref<2x8x32xf32, #tpu.memory_space<vmem>>, %arg13: memref<2x8x1xf32, #tpu.memory_space<vmem>>, %arg14: memref<2x32x8xf32, #tpu.memory_space<vmem>>, %arg15: memref<2x64x32xf32, #tpu.memory_space<vmem>>, %arg16: memref<2x32x32xf32, #tpu.memory_space<vmem>>, %arg17: memref<1x32x8xf32, #tpu.memory_space<vmem>>, %arg18: memref<1x32x8xf32, #tpu.memory_space<vmem>>, %arg19: memref<8x32xf32, #tpu.memory_space<vmem>>, %arg20: memref<8x32xf32, #tpu.memory_space<vmem>>) attributes {dimension_semantics = [#tpu.dimension_semantics<parallel>, #tpu.dimension_semantics<arbitrary>], iteration_bounds = array<i64: 2, 4>, scalar_prefetch = 0 : i64, scratch_operands = 2 : i64, tpu.core_type = #tpu.core_type<tc>, window_params = [{transform_indices = @transform_0, window_bounds = array<i64: 1, 1, 8, 4>}, {transform_indices = @transform_1, window_bounds = array<i64: 1, 1, 8, 4>}, {transform_indices = @transform_2, window_bounds = array<i64: 1, 1, 8, 3>}, {transform_indices = @transform_3, window_bounds = array<i64: 1, 8, 3>}, {pipeline_mode = #tpu.pipeline_mode<synchronous>, transform_indices = @transform_4, window_bounds = array<i64: 2, 4, 16>}, {pipeline_mode = #tpu.pipeline_mode<synchronous>, transform_indices = @transform_5, window_bounds = array<i64: 3, 32>}, {pipeline_mode = #tpu.pipeline_mode<synchronous>, transform_indices = @transform_6, window_bounds = array<i64: 3, 32>}, {pipeline_mode = #tpu.pipeline_mode<synchronous>, transform_indices = @transform_7, window_bounds = array<i64: 2, 1, 16>}, {pipeline_mode = #tpu.pipeline_mode<synchronous>, transform_indices = @transform_8, window_bounds = array<i64: 2, 16, 32>}, {pipeline_mode = #tpu.pipeline_mode<synchronous>, transform_indices = @transform_9, window_bounds = array<i64: 2, 1, 32>}, {pipeline_mode = #tpu.pipeline_mode<synchronous>, transform_indices = @transform_10, window_bounds = array<i64: 2, 8, 32>}, {pipeline_mode = #tpu.pipeline_mode<synchronous>, transform_indices = @transform_11, window_bounds = array<i64: 2, 8, 1>}, {pipeline_mode = #tpu.pipeline_mode<synchronous>, transform_indices = @transform_12, window_bounds = array<i64: 2, 32, 8>}, {pipeline_mode = #tpu.pipeline_mode<synchronous>, transform_indices = @transform_13, window_bounds = array<i64: 2, 64, 32>}, {pipeline_mode = #tpu.pipeline_mode<synchronous>, transform_indices = @transform_14, window_bounds = array<i64: 2, 32, 32>}, {transform_indices = @transform_15, window_bounds = array<i64: 1, 32, 8>}, {transform_indices = @transform_16, window_bounds = array<i64: 1, 32, 8>}]} {
    %c0 = arith.constant 0 : index
    %c0_0 = arith.constant 0 : index
    %c0_1 = arith.constant 0 : index
    %c0_2 = arith.constant 0 : index
    %0 = vector.load %arg4[%c0, %c0_0, %c0_1, %c0_2] : memref<1x1x8x3xf32, #tpu.memory_space<vmem>>, vector<1x1x8x3xf32>
    %1 = vector.shape_cast %0 : vector<1x1x8x3xf32> to vector<8x3xf32>
    %c0_3 = arith.constant 0 : index
    %c0_4 = arith.constant 0 : index
    %2 = vector.load %arg7[%c0_3, %c0_4] : memref<3x32xf32, #tpu.memory_space<vmem>>, vector<3x32xf32>
    %cst = arith.constant dense<0.000000e+00> : vector<8x32xf32>
    %3 = tpu.matmul %1, %2, %cst {dimension_numbers = #tpu.dot_dimension_numbers<[1], [0], [0], [1], [0, 0, 1, 1], [], []>} : vector<8x3xf32>, vector<3x32xf32>, vector<8x32xf32> -> vector<8x32xf32>
    %c0_5 = arith.constant 0 : index
    %c0_6 = arith.constant 0 : index
    %c0_7 = arith.constant 0 : index
    %4 = vector.load %arg5[%c0_5, %c0_6, %c0_7] : memref<1x8x3xf32, #tpu.memory_space<vmem>>, vector<1x8x3xf32>
    %5 = vector.shape_cast %4 : vector<1x8x3xf32> to vector<8x3xf32>
    %c0_8 = arith.constant 0 : index
    %c0_9 = arith.constant 0 : index
    %6 = vector.load %arg8[%c0_8, %c0_9] : memref<3x32xf32, #tpu.memory_space<vmem>>, vector<3x32xf32>
    %cst_10 = arith.constant dense<0.000000e+00> : vector<8x32xf32>
    %7 = tpu.matmul %5, %6, %cst_10 {dimension_numbers = #tpu.dot_dimension_numbers<[1], [0], [0], [1], [0, 0, 1, 1], [], []>} : vector<8x3xf32>, vector<3x32xf32>, vector<8x32xf32> -> vector<8x32xf32>
    %8 = arith.addf %3, %7 : vector<8x32xf32>
    %c0_11 = arith.constant 0 : index
    %c0_12 = arith.constant 0 : index
    %c0_13 = arith.constant 0 : index
    %c0_14 = arith.constant 0 : index
    %9 = vector.load %arg2[%c0_11, %c0_12, %c0_13, %c0_14] : memref<1x1x8x4xbf16, #tpu.memory_space<vmem>>, vector<1x1x8x4xbf16>
    %10 = vector.shape_cast %9 : vector<1x1x8x4xbf16> to vector<8x4xbf16>
    %c0_15 = arith.constant 0 : index
    %c0_16 = arith.constant 0 : index
    %c0_17 = arith.constant 0 : index
    %11 = vector.load %arg6[%c0_15, %c0_16, %c0_17] : memref<2x4x16xbf16, #tpu.memory_space<vmem>>, vector<1x4x16xbf16>
    %12 = vector.shape_cast %11 : vector<1x4x16xbf16> to vector<4x16xbf16>
    %cst_18 = arith.constant dense<0.000000e+00> : vector<8x16xf32>
    %13 = tpu.matmul %10, %12, %cst_18 {dimension_numbers = #tpu.dot_dimension_numbers<[1], [0], [0], [1], [0, 0, 1, 1], [], []>} : vector<8x4xbf16>, vector<4x16xbf16>, vector<8x16xf32> -> vector<8x16xf32>
    %14 = vector.extract_strided_slice %8 {offsets = [0, 0], sizes = [8, 16], strides = [1, 1]} : vector<8x32xf32> to vector<8x16xf32>
    %15 = arith.addf %13, %14 : vector<8x16xf32>
    %c0_19 = arith.constant 0 : index
    %c0_20 = arith.constant 0 : index
    %c0_21 = arith.constant 0 : index
    %16 = vector.load %arg9[%c0_19, %c0_20, %c0_21] : memref<2x1x16xf32, #tpu.memory_space<vmem>>, vector<1x1x16xf32>
    %17 = vector.shape_cast %16 : vector<1x1x16xf32> to vector<1x16xf32>
    %18 = vector.broadcast %17 : vector<1x16xf32> to vector<8x16xf32>
    %19 = arith.addf %15, %18 : vector<8x16xf32>
    %cst_22 = arith.constant 0.000000e+00 : f32
    %20 = vector.broadcast %cst_22 : f32 to vector<8x16xf32>
    %21 = arith.maximumf %19, %20 : vector<8x16xf32>
    %22 = arith.truncf %21 : vector<8x16xf32> to vector<8x16xbf16>
    %c0_23 = arith.constant 0 : index
    %c0_24 = arith.constant 0 : index
    %c0_25 = arith.constant 0 : index
    %23 = vector.load %arg10[%c0_23, %c0_24, %c0_25] : memref<2x16x32xbf16, #tpu.memory_space<vmem>>, vector<1x16x32xbf16>
    %24 = vector.shape_cast %23 : vector<1x16x32xbf16> to vector<16x32xbf16>
    %cst_26 = arith.constant dense<0.000000e+00> : vector<8x32xf32>
    %25 = tpu.matmul %22, %24, %cst_26 {dimension_numbers = #tpu.dot_dimension_numbers<[1], [0], [0], [1], [0, 0, 1, 1], [], []>} : vector<8x16xbf16>, vector<16x32xbf16>, vector<8x32xf32> -> vector<8x32xf32>
    %c0_27 = arith.constant 0 : index
    %c0_28 = arith.constant 0 : index
    %c0_29 = arith.constant 0 : index
    %26 = vector.load %arg11[%c0_27, %c0_28, %c0_29] : memref<2x1x32xf32, #tpu.memory_space<vmem>>, vector<1x1x32xf32>
    %27 = vector.shape_cast %26 : vector<1x1x32xf32> to vector<1x32xf32>
    %28 = vector.broadcast %27 : vector<1x32xf32> to vector<8x32xf32>
    %29 = arith.addf %25, %28 : vector<8x32xf32>
    %cst_30 = arith.constant 0.000000e+00 : f32
    %30 = vector.broadcast %cst_30 : f32 to vector<8x32xf32>
    %31 = arith.maximumf %29, %30 : vector<8x32xf32>
    %c0_31 = arith.constant 0 : index
    %c0_32 = arith.constant 0 : index
    %c0_33 = arith.constant 0 : index
    %c0_34 = arith.constant 0 : index
    %32 = vector.load %arg3[%c0_31, %c0_32, %c0_33, %c0_34] : memref<1x1x8x4xbf16, #tpu.memory_space<vmem>>, vector<1x1x8x4xbf16>
    %33 = vector.shape_cast %32 : vector<1x1x8x4xbf16> to vector<8x4xbf16>
    %c1 = arith.constant 1 : index
    %c0_35 = arith.constant 0 : index
    %c0_36 = arith.constant 0 : index
    %34 = vector.load %arg6[%c1, %c0_35, %c0_36] : memref<2x4x16xbf16, #tpu.memory_space<vmem>>, vector<1x4x16xbf16>
    %35 = vector.shape_cast %34 : vector<1x4x16xbf16> to vector<4x16xbf16>
    %cst_37 = arith.constant dense<0.000000e+00> : vector<8x16xf32>
    %36 = tpu.matmul %33, %35, %cst_37 {dimension_numbers = #tpu.dot_dimension_numbers<[1], [0], [0], [1], [0, 0, 1, 1], [], []>} : vector<8x4xbf16>, vector<4x16xbf16>, vector<8x16xf32> -> vector<8x16xf32>
    %37 = vector.extract_strided_slice %8 {offsets = [0, 16], sizes = [8, 16], strides = [1, 1]} : vector<8x32xf32> to vector<8x16xf32>
    %38 = arith.addf %36, %37 : vector<8x16xf32>
    %c1_38 = arith.constant 1 : index
    %c0_39 = arith.constant 0 : index
    %c0_40 = arith.constant 0 : index
    %39 = vector.load %arg9[%c1_38, %c0_39, %c0_40] : memref<2x1x16xf32, #tpu.memory_space<vmem>>, vector<1x1x16xf32>
    %40 = vector.shape_cast %39 : vector<1x1x16xf32> to vector<1x16xf32>
    %41 = vector.broadcast %40 : vector<1x16xf32> to vector<8x16xf32>
    %42 = arith.addf %38, %41 : vector<8x16xf32>
    %cst_41 = arith.constant 0.000000e+00 : f32
    %43 = vector.broadcast %cst_41 : f32 to vector<8x16xf32>
    %44 = arith.maximumf %42, %43 : vector<8x16xf32>
    %45 = arith.truncf %44 : vector<8x16xf32> to vector<8x16xbf16>
    %c1_42 = arith.constant 1 : index
    %c0_43 = arith.constant 0 : index
    %c0_44 = arith.constant 0 : index
    %46 = vector.load %arg10[%c1_42, %c0_43, %c0_44] : memref<2x16x32xbf16, #tpu.memory_space<vmem>>, vector<1x16x32xbf16>
    %47 = vector.shape_cast %46 : vector<1x16x32xbf16> to vector<16x32xbf16>
    %cst_45 = arith.constant dense<0.000000e+00> : vector<8x32xf32>
    %48 = tpu.matmul %45, %47, %cst_45 {dimension_numbers = #tpu.dot_dimension_numbers<[1], [0], [0], [1], [0, 0, 1, 1], [], []>} : vector<8x16xbf16>, vector<16x32xbf16>, vector<8x32xf32> -> vector<8x32xf32>
    %c1_46 = arith.constant 1 : index
    %c0_47 = arith.constant 0 : index
    %c0_48 = arith.constant 0 : index
    %49 = vector.load %arg11[%c1_46, %c0_47, %c0_48] : memref<2x1x32xf32, #tpu.memory_space<vmem>>, vector<1x1x32xf32>
    %50 = vector.shape_cast %49 : vector<1x1x32xf32> to vector<1x32xf32>
    %51 = vector.broadcast %50 : vector<1x32xf32> to vector<8x32xf32>
    %52 = arith.addf %48, %51 : vector<8x32xf32>
    %cst_49 = arith.constant 0.000000e+00 : f32
    %53 = vector.broadcast %cst_49 : f32 to vector<8x32xf32>
    %54 = arith.maximumf %52, %53 : vector<8x32xf32>
    %c0_i32 = arith.constant 0 : i32
    %55 = arith.cmpi eq, %arg1, %c0_i32 : i32
    %56 = arith.extui %55 : i1 to i32
    %c0_i32_50 = arith.constant 0 : i32
    %57 = arith.cmpi ne, %56, %c0_i32_50 : i32
    scf.if %57 {
      %cst_60 = arith.constant 0xFF800000 : f32
      %67 = vector.broadcast %cst_60 : f32 to vector<8x32xf32>
      %c0_61 = arith.constant 0 : index
      %c0_62 = arith.constant 0 : index
      %68 = vector.load %arg19[%c0_61, %c0_62] : memref<8x32xf32, #tpu.memory_space<vmem>>, vector<8x32xf32>
      tpu.vector_store %arg19[%c0_61, %c0_62], %67 {strides = array<i32>} : memref<8x32xf32, #tpu.memory_space<vmem>>, vector<8x32xf32>,
      %cst_63 = arith.constant 0xFF800000 : f32
      %69 = vector.broadcast %cst_63 : f32 to vector<8x32xf32>
      %c0_64 = arith.constant 0 : index
      %c0_65 = arith.constant 0 : index
      %70 = vector.load %arg20[%c0_64, %c0_65] : memref<8x32xf32, #tpu.memory_space<vmem>>, vector<8x32xf32>
      tpu.vector_store %arg20[%c0_64, %c0_65], %69 {strides = array<i32>} : memref<8x32xf32, #tpu.memory_space<vmem>>, vector<8x32xf32>,
    } else {
    }
    %c0_51 = arith.constant 0 : index
    %c0_52 = arith.constant 0 : index
    %58 = vector.load %arg19[%c0_51, %c0_52] : memref<8x32xf32, #tpu.memory_space<vmem>>, vector<8x32xf32>
    %59 = arith.maximumf %58, %31 : vector<8x32xf32>
    %c0_53 = arith.constant 0 : index
    %c0_54 = arith.constant 0 : index
    %60 = vector.load %arg19[%c0_53, %c0_54] : memref<8x32xf32, #tpu.memory_space<vmem>>, vector<8x32xf32>
    tpu.vector_store %arg19[%c0_53, %c0_54], %59 {strides = array<i32>} : memref<8x32xf32, #tpu.memory_space<vmem>>, vector<8x32xf32>,
    %c0_55 = arith.constant 0 : index
    %c0_56 = arith.constant 0 : index
    %61 = vector.load %arg20[%c0_55, %c0_56] : memref<8x32xf32, #tpu.memory_space<vmem>>, vector<8x32xf32>
    %62 = arith.maximumf %61, %54 : vector<8x32xf32>
    %c0_57 = arith.constant 0 : index
    %c0_58 = arith.constant 0 : index
    %63 = vector.load %arg20[%c0_57, %c0_58] : memref<8x32xf32, #tpu.memory_space<vmem>>, vector<8x32xf32>
    tpu.vector_store %arg20[%c0_57, %c0_58], %62 {strides = array<i32>} : memref<8x32xf32, #tpu.memory_space<vmem>>, vector<8x32xf32>,
    %c3_i32 = arith.constant 3 : i32
    %64 = arith.cmpi eq, %arg1, %c3_i32 : i32
    %65 = arith.extui %64 : i1 to i32
    %c0_i32_59 = arith.constant 0 : i32
    %66 = arith.cmpi ne, %65, %c0_i32_59 : i32
    scf.if %66 {
      %c0_60 = arith.constant 0 : index
      %c0_61 = arith.constant 0 : index
      %67 = vector.load %arg19[%c0_60, %c0_61] : memref<8x32xf32, #tpu.memory_space<vmem>>, vector<8x32xf32>
      %68 = tpu.transpose %67, [1, 0] : vector<8x32xf32> -> vector<32x8xf32>
      %c0_62 = arith.constant 0 : index
      %c0_63 = arith.constant 0 : index
      %69 = vector.load %arg20[%c0_62, %c0_63] : memref<8x32xf32, #tpu.memory_space<vmem>>, vector<8x32xf32>
      %70 = tpu.transpose %69, [1, 0] : vector<8x32xf32> -> vector<32x8xf32>
      %cst_64 = arith.constant dense<0.000000e+00> : vector<8xf32>
      %71 = vector.multi_reduction <add>, %68, %cst_64 [0] : vector<32x8xf32> to vector<8xf32>
      %72 = vector.shape_cast %71 : vector<8xf32> to vector<1x8xf32>
      %73 = vector.broadcast %72 : vector<1x8xf32> to vector<32x8xf32>
      %74 = arith.mulf %68, %73 : vector<32x8xf32>
      %cst_65 = arith.constant dense<0.000000e+00> : vector<32xf32>
      %75 = vector.multi_reduction <add>, %74, %cst_65 [1] : vector<32x8xf32> to vector<32xf32>
      %76 = vector.shape_cast %75 : vector<32xf32> to vector<32x1xf32>
      %c0_66 = arith.constant 0 : index
      %c0_67 = arith.constant 0 : index
      %c0_68 = arith.constant 0 : index
      %77 = vector.load %arg12[%c0_66, %c0_67, %c0_68] : memref<2x8x32xf32, #tpu.memory_space<vmem>>, vector<1x8x32xf32>
      %78 = vector.shape_cast %77 : vector<1x8x32xf32> to vector<8x32xf32>
      %cst_69 = arith.constant dense<0.000000e+00> : vector<8x1xf32>
      %79 = tpu.matmul %78, %76, %cst_69 {dimension_numbers = #tpu.dot_dimension_numbers<[1], [0], [0], [1], [0, 0, 1, 1], [], []>} : vector<8x32xf32>, vector<32x1xf32>, vector<8x1xf32> -> vector<8x1xf32>
      %c0_70 = arith.constant 0 : index
      %c0_71 = arith.constant 0 : index
      %c0_72 = arith.constant 0 : index
      %80 = vector.load %arg13[%c0_70, %c0_71, %c0_72] : memref<2x8x1xf32, #tpu.memory_space<vmem>>, vector<1x8x1xf32>
      %81 = vector.shape_cast %80 : vector<1x8x1xf32> to vector<8x1xf32>
      %82 = arith.addf %79, %81 : vector<8x1xf32>
      %cst_73 = arith.constant 0.000000e+00 : f32
      %83 = vector.broadcast %cst_73 : f32 to vector<8x1xf32>
      %84 = arith.maximumf %82, %83 : vector<8x1xf32>
      %c0_74 = arith.constant 0 : index
      %c0_75 = arith.constant 0 : index
      %c0_76 = arith.constant 0 : index
      %85 = vector.load %arg14[%c0_74, %c0_75, %c0_76] : memref<2x32x8xf32, #tpu.memory_space<vmem>>, vector<1x32x8xf32>
      %86 = vector.shape_cast %85 : vector<1x32x8xf32> to vector<32x8xf32>
      %cst_77 = arith.constant dense<0.000000e+00> : vector<32x1xf32>
      %87 = tpu.matmul %86, %84, %cst_77 {dimension_numbers = #tpu.dot_dimension_numbers<[1], [0], [0], [1], [0, 0, 1, 1], [], []>} : vector<32x8xf32>, vector<8x1xf32>, vector<32x1xf32> -> vector<32x1xf32>
      %88 = arith.negf %87 : vector<32x1xf32>
      %89 = math.exp %88 : vector<32x1xf32>
      %cst_78 = arith.constant 1.000000e+00 : f32
      %90 = vector.broadcast %cst_78 : f32 to vector<32x1xf32>
      %91 = arith.addf %90, %89 : vector<32x1xf32>
      %92 = arith.divf %90, %91 : vector<32x1xf32>
      %93 = vector.broadcast %92 : vector<32x1xf32> to vector<32x8xf32>
      %94 = arith.mulf %68, %93 : vector<32x8xf32>
      %cst_79 = arith.constant dense<0.000000e+00> : vector<8xf32>
      %95 = vector.multi_reduction <add>, %70, %cst_79 [0] : vector<32x8xf32> to vector<8xf32>
      %96 = vector.shape_cast %95 : vector<8xf32> to vector<1x8xf32>
      %97 = vector.broadcast %96 : vector<1x8xf32> to vector<32x8xf32>
      %98 = arith.mulf %70, %97 : vector<32x8xf32>
      %cst_80 = arith.constant dense<0.000000e+00> : vector<32xf32>
      %99 = vector.multi_reduction <add>, %98, %cst_80 [1] : vector<32x8xf32> to vector<32xf32>
      %100 = vector.shape_cast %99 : vector<32xf32> to vector<32x1xf32>
      %c1_81 = arith.constant 1 : index
      %c0_82 = arith.constant 0 : index
      %c0_83 = arith.constant 0 : index
      %101 = vector.load %arg12[%c1_81, %c0_82, %c0_83] : memref<2x8x32xf32, #tpu.memory_space<vmem>>, vector<1x8x32xf32>
      %102 = vector.shape_cast %101 : vector<1x8x32xf32> to vector<8x32xf32>
      %cst_84 = arith.constant dense<0.000000e+00> : vector<8x1xf32>
      %103 = tpu.matmul %102, %100, %cst_84 {dimension_numbers = #tpu.dot_dimension_numbers<[1], [0], [0], [1], [0, 0, 1, 1], [], []>} : vector<8x32xf32>, vector<32x1xf32>, vector<8x1xf32> -> vector<8x1xf32>
      %c1_85 = arith.constant 1 : index
      %c0_86 = arith.constant 0 : index
      %c0_87 = arith.constant 0 : index
      %104 = vector.load %arg13[%c1_85, %c0_86, %c0_87] : memref<2x8x1xf32, #tpu.memory_space<vmem>>, vector<1x8x1xf32>
      %105 = vector.shape_cast %104 : vector<1x8x1xf32> to vector<8x1xf32>
      %106 = arith.addf %103, %105 : vector<8x1xf32>
      %cst_88 = arith.constant 0.000000e+00 : f32
      %107 = vector.broadcast %cst_88 : f32 to vector<8x1xf32>
      %108 = arith.maximumf %106, %107 : vector<8x1xf32>
      %c1_89 = arith.constant 1 : index
      %c0_90 = arith.constant 0 : index
      %c0_91 = arith.constant 0 : index
      %109 = vector.load %arg14[%c1_89, %c0_90, %c0_91] : memref<2x32x8xf32, #tpu.memory_space<vmem>>, vector<1x32x8xf32>
      %110 = vector.shape_cast %109 : vector<1x32x8xf32> to vector<32x8xf32>
      %cst_92 = arith.constant dense<0.000000e+00> : vector<32x1xf32>
      %111 = tpu.matmul %110, %108, %cst_92 {dimension_numbers = #tpu.dot_dimension_numbers<[1], [0], [0], [1], [0, 0, 1, 1], [], []>} : vector<32x8xf32>, vector<8x1xf32>, vector<32x1xf32> -> vector<32x1xf32>
      %112 = arith.negf %111 : vector<32x1xf32>
      %113 = math.exp %112 : vector<32x1xf32>
      %cst_93 = arith.constant 1.000000e+00 : f32
      %114 = vector.broadcast %cst_93 : f32 to vector<32x1xf32>
      %115 = arith.addf %114, %113 : vector<32x1xf32>
      %116 = arith.divf %114, %115 : vector<32x1xf32>
      %117 = vector.broadcast %116 : vector<32x1xf32> to vector<32x8xf32>
      %118 = arith.mulf %70, %117 : vector<32x8xf32>
      %c0_94 = arith.constant 0 : index
      %c0_95 = arith.constant 0 : index
      %c0_96 = arith.constant 0 : index
      %119 = vector.load %arg15[%c0_94, %c0_95, %c0_96] : memref<2x64x32xf32, #tpu.memory_space<vmem>>, vector<1x64x32xf32>
      %120 = vector.shape_cast %119 : vector<1x64x32xf32> to vector<64x32xf32>
      %cst_97 = arith.constant dense<0.000000e+00> : vector<64x8xf32>
      %121 = tpu.matmul %120, %118, %cst_97 {dimension_numbers = #tpu.dot_dimension_numbers<[1], [0], [0], [1], [0, 0, 1, 1], [], []>} : vector<64x32xf32>, vector<32x8xf32>, vector<64x8xf32> -> vector<64x8xf32>
      %122 = vector.extract_strided_slice %121 {offsets = [0, 0], sizes = [32, 8], strides = [1, 1]} : vector<64x8xf32> to vector<32x8xf32>
      %123 = vector.extract_strided_slice %121 {offsets = [32, 0], sizes = [32, 8], strides = [1, 1]} : vector<64x8xf32> to vector<32x8xf32>
      %c0_98 = arith.constant 0 : index
      %c0_99 = arith.constant 0 : index
      %c0_100 = arith.constant 0 : index
      %124 = vector.load %arg16[%c0_98, %c0_99, %c0_100] : memref<2x32x32xf32, #tpu.memory_space<vmem>>, vector<1x32x32xf32>
      %125 = vector.shape_cast %124 : vector<1x32x32xf32> to vector<32x32xf32>
      %cst_101 = arith.constant dense<0.000000e+00> : vector<32x8xf32>
      %126 = tpu.matmul %125, %94, %cst_101 {dimension_numbers = #tpu.dot_dimension_numbers<[1], [0], [0], [1], [0, 0, 1, 1], [], []>} : vector<32x32xf32>, vector<32x8xf32>, vector<32x8xf32> -> vector<32x8xf32>
      %cst_102 = arith.constant dense<0.000000e+00> : vector<8xf32>
      %127 = vector.multi_reduction <add>, %122, %cst_102 [0] : vector<32x8xf32> to vector<8xf32>
      %128 = vector.shape_cast %127 : vector<8xf32> to vector<1x8xf32>
      %129 = vector.broadcast %128 : vector<1x8xf32> to vector<32x8xf32>
      %130 = arith.mulf %129, %123 : vector<32x8xf32>
      %cst_103 = arith.constant dense<0.000000e+00> : vector<8xf32>
      %131 = vector.multi_reduction <add>, %130, %cst_103 [0] : vector<32x8xf32> to vector<8xf32>
      %132 = vector.shape_cast %131 : vector<8xf32> to vector<1x8xf32>
      %cst_104 = arith.constant 9.99999971E-10 : f32
      %133 = vector.broadcast %cst_104 : f32 to vector<1x8xf32>
      %134 = arith.addf %133, %132 : vector<1x8xf32>
      %135 = vector.broadcast %134 : vector<1x8xf32> to vector<32x8xf32>
      %136 = arith.divf %130, %135 : vector<32x8xf32>
      %cst_105 = arith.constant dense<0xFF800000> : vector<8xf32>
      %137 = vector.multi_reduction <maximumf>, %136, %cst_105 [0] : vector<32x8xf32> to vector<8xf32>
      %138 = vector.shape_cast %137 : vector<8xf32> to vector<1x8xf32>
      %139 = vector.broadcast %138 : vector<1x8xf32> to vector<32x8xf32>
      %140 = arith.subf %136, %139 : vector<32x8xf32>
      %141 = math.exp %140 : vector<32x8xf32>
      %cst_106 = arith.constant dense<0.000000e+00> : vector<8xf32>
      %142 = vector.multi_reduction <add>, %141, %cst_106 [0] : vector<32x8xf32> to vector<8xf32>
      %143 = vector.shape_cast %142 : vector<8xf32> to vector<1x8xf32>
      %144 = vector.broadcast %143 : vector<1x8xf32> to vector<32x8xf32>
      %145 = arith.divf %141, %144 : vector<32x8xf32>
      %146 = arith.mulf %145, %126 : vector<32x8xf32>
      %147 = arith.addf %146, %94 : vector<32x8xf32>
      %c0_107 = arith.constant 0 : index
      %c0_108 = arith.constant 0 : index
      %c0_109 = arith.constant 0 : index
      %148 = vector.load %arg17[%c0_107, %c0_108, %c0_109] : memref<1x32x8xf32, #tpu.memory_space<vmem>>, vector<1x32x8xf32>
      %149 = vector.shape_cast %148 : vector<1x32x8xf32> to vector<32x8xf32>
      %150 = vector.shape_cast %147 : vector<32x8xf32> to vector<1x32x8xf32>
      tpu.vector_store %arg17[%c0_107, %c0_108, %c0_109], %150 {strides = array<i32>} : memref<1x32x8xf32, #tpu.memory_space<vmem>>, vector<1x32x8xf32>,
      %c1_110 = arith.constant 1 : index
      %c0_111 = arith.constant 0 : index
      %c0_112 = arith.constant 0 : index
      %151 = vector.load %arg15[%c1_110, %c0_111, %c0_112] : memref<2x64x32xf32, #tpu.memory_space<vmem>>, vector<1x64x32xf32>
      %152 = vector.shape_cast %151 : vector<1x64x32xf32> to vector<64x32xf32>
      %cst_113 = arith.constant dense<0.000000e+00> : vector<64x8xf32>
      %153 = tpu.matmul %152, %94, %cst_113 {dimension_numbers = #tpu.dot_dimension_numbers<[1], [0], [0], [1], [0, 0, 1, 1], [], []>} : vector<64x32xf32>, vector<32x8xf32>, vector<64x8xf32> -> vector<64x8xf32>
      %154 = vector.extract_strided_slice %153 {offsets = [0, 0], sizes = [32, 8], strides = [1, 1]} : vector<64x8xf32> to vector<32x8xf32>
      %155 = vector.extract_strided_slice %153 {offsets = [32, 0], sizes = [32, 8], strides = [1, 1]} : vector<64x8xf32> to vector<32x8xf32>
      %c1_114 = arith.constant 1 : index
      %c0_115 = arith.constant 0 : index
      %c0_116 = arith.constant 0 : index
      %156 = vector.load %arg16[%c1_114, %c0_115, %c0_116] : memref<2x32x32xf32, #tpu.memory_space<vmem>>, vector<1x32x32xf32>
      %157 = vector.shape_cast %156 : vector<1x32x32xf32> to vector<32x32xf32>
      %cst_117 = arith.constant dense<0.000000e+00> : vector<32x8xf32>
      %158 = tpu.matmul %157, %118, %cst_117 {dimension_numbers = #tpu.dot_dimension_numbers<[1], [0], [0], [1], [0, 0, 1, 1], [], []>} : vector<32x32xf32>, vector<32x8xf32>, vector<32x8xf32> -> vector<32x8xf32>
      %cst_118 = arith.constant dense<0.000000e+00> : vector<8xf32>
      %159 = vector.multi_reduction <add>, %154, %cst_118 [0] : vector<32x8xf32> to vector<8xf32>
      %160 = vector.shape_cast %159 : vector<8xf32> to vector<1x8xf32>
      %161 = vector.broadcast %160 : vector<1x8xf32> to vector<32x8xf32>
      %162 = arith.mulf %161, %155 : vector<32x8xf32>
      %cst_119 = arith.constant dense<0.000000e+00> : vector<8xf32>
      %163 = vector.multi_reduction <add>, %162, %cst_119 [0] : vector<32x8xf32> to vector<8xf32>
      %164 = vector.shape_cast %163 : vector<8xf32> to vector<1x8xf32>
      %cst_120 = arith.constant 9.99999971E-10 : f32
      %165 = vector.broadcast %cst_120 : f32 to vector<1x8xf32>
      %166 = arith.addf %165, %164 : vector<1x8xf32>
      %167 = vector.broadcast %166 : vector<1x8xf32> to vector<32x8xf32>
      %168 = arith.divf %162, %167 : vector<32x8xf32>
      %cst_121 = arith.constant dense<0xFF800000> : vector<8xf32>
      %169 = vector.multi_reduction <maximumf>, %168, %cst_121 [0] : vector<32x8xf32> to vector<8xf32>
      %170 = vector.shape_cast %169 : vector<8xf32> to vector<1x8xf32>
      %171 = vector.broadcast %170 : vector<1x8xf32> to vector<32x8xf32>
      %172 = arith.subf %168, %171 : vector<32x8xf32>
      %173 = math.exp %172 : vector<32x8xf32>
      %cst_122 = arith.constant dense<0.000000e+00> : vector<8xf32>
      %174 = vector.multi_reduction <add>, %173, %cst_122 [0] : vector<32x8xf32> to vector<8xf32>
      %175 = vector.shape_cast %174 : vector<8xf32> to vector<1x8xf32>
      %176 = vector.broadcast %175 : vector<1x8xf32> to vector<32x8xf32>
      %177 = arith.divf %173, %176 : vector<32x8xf32>
      %178 = arith.mulf %177, %158 : vector<32x8xf32>
      %179 = arith.addf %178, %118 : vector<32x8xf32>
      %c0_123 = arith.constant 0 : index
      %c0_124 = arith.constant 0 : index
      %c0_125 = arith.constant 0 : index
      %180 = vector.load %arg18[%c0_123, %c0_124, %c0_125] : memref<1x32x8xf32, #tpu.memory_space<vmem>>, vector<1x32x8xf32>
      %181 = vector.shape_cast %180 : vector<1x32x8xf32> to vector<32x8xf32>
      %182 = vector.shape_cast %179 : vector<32x8xf32> to vector<1x32x8xf32>
      tpu.vector_store %arg18[%c0_123, %c0_124, %c0_125], %182 {strides = array<i32>} : memref<1x32x8xf32, #tpu.memory_space<vmem>>, vector<1x32x8xf32>,
    } else {
    }
    return
  }
  func.func @transform_0(%arg0: i32, %arg1: i32) -> (i32, i32, i32, i32) {
    %c0_i32 = arith.constant 0 : i32
    %c0_i32_0 = arith.constant 0 : i32
    %c0_i32_1 = arith.constant 0 : i32
    return %arg0, %arg1, %c0_i32, %c0_i32_0 : i32, i32, i32, i32
  }
  func.func @transform_1(%arg0: i32, %arg1: i32) -> (i32, i32, i32, i32) {
    %c0_i32 = arith.constant 0 : i32
    %c0_i32_0 = arith.constant 0 : i32
    %c0_i32_1 = arith.constant 0 : i32
    return %arg0, %arg1, %c0_i32, %c0_i32_0 : i32, i32, i32, i32
  }
  func.func @transform_2(%arg0: i32, %arg1: i32) -> (i32, i32, i32, i32) {
    %c0_i32 = arith.constant 0 : i32
    %c0_i32_0 = arith.constant 0 : i32
    %c0_i32_1 = arith.constant 0 : i32
    return %arg0, %arg1, %c0_i32, %c0_i32_0 : i32, i32, i32, i32
  }
  func.func @transform_3(%arg0: i32, %arg1: i32) -> (i32, i32, i32) {
    %c0_i32 = arith.constant 0 : i32
    %c0_i32_0 = arith.constant 0 : i32
    %c0_i32_1 = arith.constant 0 : i32
    return %arg0, %c0_i32, %c0_i32_0 : i32, i32, i32
  }
  func.func @transform_4(%arg0: i32, %arg1: i32) -> (i32, i32, i32) {
    %c0_i32 = arith.constant 0 : i32
    %c0_i32_0 = arith.constant 0 : i32
    %c0_i32_1 = arith.constant 0 : i32
    %c0_i32_2 = arith.constant 0 : i32
    return %c0_i32, %c0_i32_0, %c0_i32_1 : i32, i32, i32
  }
  func.func @transform_5(%arg0: i32, %arg1: i32) -> (i32, i32) {
    %c0_i32 = arith.constant 0 : i32
    %c0_i32_0 = arith.constant 0 : i32
    %c0_i32_1 = arith.constant 0 : i32
    return %c0_i32, %c0_i32_0 : i32, i32
  }
  func.func @transform_6(%arg0: i32, %arg1: i32) -> (i32, i32) {
    %c0_i32 = arith.constant 0 : i32
    %c0_i32_0 = arith.constant 0 : i32
    %c0_i32_1 = arith.constant 0 : i32
    return %c0_i32, %c0_i32_0 : i32, i32
  }
  func.func @transform_7(%arg0: i32, %arg1: i32) -> (i32, i32, i32) {
    %c0_i32 = arith.constant 0 : i32
    %c0_i32_0 = arith.constant 0 : i32
    %c0_i32_1 = arith.constant 0 : i32
    %c0_i32_2 = arith.constant 0 : i32
    return %c0_i32, %c0_i32_0, %c0_i32_1 : i32, i32, i32
  }
  func.func @transform_8(%arg0: i32, %arg1: i32) -> (i32, i32, i32) {
    %c0_i32 = arith.constant 0 : i32
    %c0_i32_0 = arith.constant 0 : i32
    %c0_i32_1 = arith.constant 0 : i32
    %c0_i32_2 = arith.constant 0 : i32
    return %c0_i32, %c0_i32_0, %c0_i32_1 : i32, i32, i32
  }
  func.func @transform_9(%arg0: i32, %arg1: i32) -> (i32, i32, i32) {
    %c0_i32 = arith.constant 0 : i32
    %c0_i32_0 = arith.constant 0 : i32
    %c0_i32_1 = arith.constant 0 : i32
    %c0_i32_2 = arith.constant 0 : i32
    return %c0_i32, %c0_i32_0, %c0_i32_1 : i32, i32, i32
  }
  func.func @transform_10(%arg0: i32, %arg1: i32) -> (i32, i32, i32) {
    %c0_i32 = arith.constant 0 : i32
    %c0_i32_0 = arith.constant 0 : i32
    %c0_i32_1 = arith.constant 0 : i32
    %c0_i32_2 = arith.constant 0 : i32
    return %c0_i32, %c0_i32_0, %c0_i32_1 : i32, i32, i32
  }
  func.func @transform_11(%arg0: i32, %arg1: i32) -> (i32, i32, i32) {
    %c0_i32 = arith.constant 0 : i32
    %c0_i32_0 = arith.constant 0 : i32
    %c0_i32_1 = arith.constant 0 : i32
    %c0_i32_2 = arith.constant 0 : i32
    return %c0_i32, %c0_i32_0, %c0_i32_1 : i32, i32, i32
  }
  func.func @transform_12(%arg0: i32, %arg1: i32) -> (i32, i32, i32) {
    %c0_i32 = arith.constant 0 : i32
    %c0_i32_0 = arith.constant 0 : i32
    %c0_i32_1 = arith.constant 0 : i32
    %c0_i32_2 = arith.constant 0 : i32
    return %c0_i32, %c0_i32_0, %c0_i32_1 : i32, i32, i32
  }
  func.func @transform_13(%arg0: i32, %arg1: i32) -> (i32, i32, i32) {
    %c0_i32 = arith.constant 0 : i32
    %c0_i32_0 = arith.constant 0 : i32
    %c0_i32_1 = arith.constant 0 : i32
    %c0_i32_2 = arith.constant 0 : i32
    return %c0_i32, %c0_i32_0, %c0_i32_1 : i32, i32, i32
  }
  func.func @transform_14(%arg0: i32, %arg1: i32) -> (i32, i32, i32) {
    %c0_i32 = arith.constant 0 : i32
    %c0_i32_0 = arith.constant 0 : i32
    %c0_i32_1 = arith.constant 0 : i32
    %c0_i32_2 = arith.constant 0 : i32
    return %c0_i32, %c0_i32_0, %c0_i32_1 : i32, i32, i32
  }
  func.func @transform_15(%arg0: i32, %arg1: i32) -> (i32, i32, i32) {
    %c0_i32 = arith.constant 0 : i32
    %c0_i32_0 = arith.constant 0 : i32
    %c0_i32_1 = arith.constant 0 : i32
    return %arg0, %c0_i32, %c0_i32_0 : i32, i32, i32
  }
  func.func @transform_16(%arg0: i32, %arg1: i32) -> (i32, i32, i32) {
    %c0_i32 = arith.constant 0 : i32
    %c0_i32_0 = arith.constant 0 : i32
    %c0_i32_1 = arith.constant 0 : i32
    return %arg0, %c0_i32, %c0_i32_0 : i32, i32, i32
  }
}

</mosaic_0001>

<bundles_post_ra>
// kernel: custom-call.10
= control target key start
LH: loop header
LB: loop body
LE: loop exit
PB: predicated region body
PF: predicated region fallthrough
CT: control target
= control target key end

     0   :  { %s6_s0 = inlined_call_operand.vmem [shape: f32[2,16], index: 0, kind: output, shape index: {}]  }

// kernel: csanet_set_abstraction.2
= control target key start
LH: loop header
LB: loop body
LE: loop exit
PB: predicated region body
PF: predicated region fallthrough
CT: control target
= control target key end

     0   :  { %s591_s15 = smov 0   ;;  %s593_s16 = smov 0   ;;  %s633_s0 = inlined_call_operand.vmem [shape: f32[2,8,3], index: 0, kind: input, shape index: {}]   ;;  %s634_s1 = inlined_call_operand.vmem [shape: f32[2,3,128], index: 1, kind: input, shape index: {}]   ;;  %s635_s2 = inlined_call_operand.vmem [shape: f32[2,8,1], index: 2, kind: input, shape index: {}]   ;;  %s636_s3 = inlined_call_operand.vmem [shape: f32[2,1,128], index: 3, kind: input, shape index: {}]   ;;  %s637_s4 = inlined_call_operand.vmem [shape: f32[2,8,128], index: 4, kind: output, shape index: {}]  }
   0x1   :  { %s595_s17 = smov 0  }
   0x2 LB: > { %s26_s18 = sadd.s32 1, %s557_s16  ;;  %p494_p0 = scmp.ge.s32.totalorder %s561_s17, 1  ;;  %s561_s17 = sphi %s595_s17, %s14_s17   ;;  %s557_s16 = sphi %s593_s16, %s639_s16   ;;  %s553_s15 = sphi %s591_s15, %s638_s15  }
   0x3   : > { %p28_p1 = scmp.ge.s32.totalorder %s26_s18, 2  ;;  %p211_p2 = scmp.lt.s32.totalorder %s561_s17, 3 }
   0x5   : > { %s641_s18 = smov (%p28_p1, %s26_s18), 0  ;;  %p212_p3 = pnand %p494_p0, %p211_p2 }
   0x6   : > { %p255_p4 = scmp.lt.s32.totalorder (!%p212_p3), %s553_s15, 1 }
   0x7   : > { %215 = sbr.rel (%p212_p3) target bundleno = 217 (0xd9), region = 36 }
   0xc   : > { %v563_v0 = vmov 0.0   ;;  %vm564_vm0 = vmmov 0   ;;  %s643_s15 = smov (!%p255_p4, %s553_s15), 1  ;;  %v565_v1 = vmov 0   ;;  %vm289_vm1 = vcmask 1042432  }
   0xd   : > { %506 = vmatprep.subr.mxu0 %v563_v0  ;;  %508 = vmatprep.mubr.msk.f32.mxu0 %vm564_vm0, %v563_v0  ;;  %s496_s19 = sshll.u32 %s643_s15, 2  ;;  %s495_s20 = sshll.u32 %s643_s15, 3  ;;  %vm285_vm2 = vcmask 23552  }
   0xe   : > { %538 = vset.pattern.permute.xlu0 %v565_v1  ;;  %s265_s23 = scalar_lea.vmem %s634_s1, %s496_s19  ;;  %s258_s26 = scalar_lea.vmem %s633_s0, %s495_s20 }
   0xf   : > { %v284_v2 = vld [vmem:[%s265_s23] sm:$0x7]  ;;  %s269_s29 = scalar_lea.vmem %s635_s2, %s495_s20  ;;  %s275_s6 = scalar_lea.vmem %s636_s3, %s643_s15 }
  0x10   : > { %v283_v3 = vld [vmem:[%s258_s26] sm:$0xff]  ;;  %507 = vmatpush3.msk.msra.mxu0 %vm289_vm1, %v284_v2  ;;  %s282_s9 = scalar_lea.vmem %s637_s4, %s495_s20 }
  0x11   : > { %v364_v4 = vld [vmem:[%s269_s29] sm:$0xff]  ;;  %509 = vmatmul.mubr.msk.f32.vlgmr.msra.gmra.mxu0 %vm285_vm2, %v283_v3 }
  0x12   : > { %367 = vperm.xlu0 %538, %v364_v4   ;;  %v501_v8 = vld [vmem:[%s275_s6] ss:$0 sm:$0xff] }
  0x8d   : > { %v368_v6 = vpop.permute.xlu0 %367 }
  0xd1   : > { %v359_v5 = vpop.f32.mrf.mxu0 }
  0xd2   : > { %v363_v7 = vmul.f32 -2.0, %v359_v5 }
  0xd3   : > { %v510_v9 = vpop.f32.mrf.mxu0 }
  0xd4   : > { %v370_v10 = vadd.f32 %v368_v6, %v363_v7 }
  0xd6   : > { %v378_v11 = vadd.f32 %v501_v8, %v370_v10 }
  0xd8   : > { %379 = vst [vmem:[%s282_s9] sm:$0xff] %v378_v11 }
  0xd9 PF: > { %s14_s17 = sadd.s32 1, %s561_s17   ;;  %s638_s15 = smov %s557_s16 }
  0xda   : > { %p11_p5 = scmp.ge.s32.totalorder %s14_s17, 4   ;;  %s639_s16 = smov %s641_s18 }
  0xdc   :  { %13 = sbr.rel (!%p11_p5) target bundleno = 2 (0x2), region = 75 }

// kernel: csanet_set_abstraction.3
= control target key start
LH: loop header
LB: loop body
LE: loop exit
PB: predicated region body
PF: predicated region fallthrough
CT: control target
= control target key end

     0   :  { %s3002_s21 = smov 0   ;;  %s3004_s22 = smov 0   ;;  %s3457_s0 = inlined_call_operand.vmem [shape: bf16[2,4,8,4], index: 0, kind: input, shape index: {}]   ;;  %s3458_s1 = inlined_call_operand.vmem [shape: bf16[2,4,8,4], index: 1, kind: input, shape index: {}]   ;;  %s3459_s2 = inlined_call_operand.vmem [shape: f32[2,4,8,3], index: 2, kind: input, shape index: {}]   ;;  %s3460_s3 = inlined_call_operand.vmem [shape: f32[2,8,3], index: 3, kind: input, shape index: {}]   ;;  %s3461_s4 = inlined_call_operand.vmem [shape: bf16[2,4,16], index: 4, kind: input, shape index: {}]   ;;  %s3462_s5 = inlined_call_operand.vmem [shape: f32[3,32], index: 5, kind: input, shape index: {}]   ;;  %s3463_s6 = inlined_call_operand.vmem [shape: f32[3,32], index: 6, kind: input, shape index: {}]   ;;  %s3464_s7 = inlined_call_operand.vmem [shape: f32[2,1,16], index: 7, kind: input, shape index: {}]   ;;  %s3465_s8 = inlined_call_operand.vmem [shape: bf16[2,16,32], index: 8, kind: input, shape index: {}]   ;;  %s3466_s9 = inlined_call_operand.vmem [shape: f32[2,1,32], index: 9, kind: input, shape index: {}]   ;;  %s3467_s10 = inlined_call_operand.vmem [shape: f32[2,8,32], index: 10, kind: input, shape index: {}]   ;;  %s3468_s11 = inlined_call_operand.vmem [shape: f32[2,8,1], index: 11, kind: input, shape index: {}]   ;;  %s3469_s12 = inlined_call_operand.vmem [shape: f32[2,32,8], index: 12, kind: input, shape index: {}]   ;;  %s3470_s13 = inlined_call_operand.vmem [shape: f32[2,64,32], index: 13, kind: input, shape index: {}]   ;;  %s3471_s14 = inlined_call_operand.vmem [shape: f32[2,32,32], index: 14, kind: input, shape index: {}]   ;;  %s3472_s15 = inlined_call_operand.vmem [shape: f32[2,32,8], index: 15, kind: output, shape index: {0}]   ;;  %s3473_s16 = inlined_call_operand.vmem [shape: f32[2,32,8], index: 16, kind: output, shape index: {1}]  }
   0x1   :  { %3475 = sst [smem:[#allocation7_spill]] %s3457_s0  ;;  %s3006_s23 = smov 0  }
   0x2   :  { %3476 = sst [smem:[#allocation8_spill]] %s3460_s3  ;;  %s3008_s24 = smov 0  }
   0x3   :  { %3477 = sst [smem:[#allocation9_spill]] %s3462_s5  ;;  %s3010_s25 = smov 0  }
   0x4   :  { %3478 = sst [smem:[#allocation10_spill]] %s3463_s6 }
   0x5   :  { %3479 = sst [smem:[#allocation11_spill]] %s3472_s15 }
   0x6 LB: > { %3480 = sst [smem:[#allocation4_spill]] %s2904_s24  ;;  %s36_s26 = sadd.s32 1, %s2900_s23  ;;  %s2908_s25 = sphi %s3010_s25, %s27_s25   ;;  %s2904_s24 = sphi %s3008_s24, %s3490_s24   ;;  %s2900_s23 = sphi %s3006_s23, %s3492_s23   ;;  %s2896_s22 = sphi %s3004_s22, %s3488_s22   ;;  %s2892_s21 = sphi %s3002_s21, %s3491_s21  }
   0x7   : > { %s39_s27 = sadd.s32 1, %s2904_s24  ;;  %p37_p0 = scmp.ge.s32.totalorder %s36_s26, 4 }
   0x8   : > { %p2454_p1 = scmp.ge.s32.totalorder %s2908_s25, 1  ;;  %p521_p2 = scmp.lt.s32.totalorder %s2908_s25, 9 }
   0x9   : > { %s3494_s26 = smov (%p37_p0, %s36_s26), 0  ;;  %s3496_s27 = smov (!%p37_p0, %s39_s27), %s2904_s24 }
   0xa   : > { %3481 = sst [smem:[#allocation5_spill]] %s3494_s26  ;;  %p522_p3 = pnand %p2454_p1, %p521_p2 }
   0xb   : > { %p41_p4 = scmp.ge.s32.totalorder %s3496_s27, 2  ;;  %s3483_s6 = sld [smem:[#allocation10_spill]] (!%p522_p3) }
   0xc   : > { %525 = sbr.rel (%p522_p3) target bundleno = 1974 (0x7b6), region = 80  ;;  %p599_p5 = scmp.lt.s32.totalorder (!%p522_p3), %s2896_s22, 1 }
   0xd   : > { %s3498_s27 = smov (%p41_p4, %s3496_s27), 0  ;;  %s3484_s5 = sld [smem:[#allocation9_spill]] (!%p522_p3) }
   0xe   : > { %3482 = sst [smem:[#allocation6_spill]] %s3498_s27  ;;  %p601_p6 = scmp.lt.s32.totalorder (!%p522_p3), %s2892_s21, 3 }
   0xf   : > { %s3485_s3 = sld [smem:[#allocation8_spill]] (!%p522_p3)  ;;  %p2485_p7 = scmp.ne.s32.totalorder (!%p522_p3), %s2892_s21, 0 }
  0x10   : > { %s3486_s15 = sld [smem:[#allocation11_spill]] (!%p522_p3) }
  0x11   : > { %v641_v0 = vld [vmem:[%s3483_s6] sm:$0x7]  ;;  %vm646_vm0 = vcmask 1042432   ;;  %v2910_v1 = vmov 0.0   ;;  %vm2911_vm1 = vmmov 0   ;;  %s3500_s22 = smov (!%p599_p5, %s2896_s22), 1 }
  0x12   : > { %2623 = vmatprep.subr.mxu0 %v2910_v1  ;;  %2625 = vmatprep.mubr.msk.f32.mxu0 %vm2911_vm1, %v2910_v1  ;;  %v797_v3 = vld [vmem:[%s3461_s4] sm:$0x3]  ;;  %vm802_vm2 = vcmask 1041408   ;;  %vm642_vm3 = vcmask 23552   ;;  %s2461_s19 = sshll.u32 %s3500_s22, 3  ;;  %s2549_s20 = sshll.u32 %s3500_s22, 5 }
  0x13   : > { %v639_v2 = vld [vmem:[%s3484_s5] sm:$0x7]  ;;  %2624 = vmatpush3.msk.msra.mxu0 %vm646_vm0, %v641_v0  ;;  %2628 = vmatprep.subr.mxu1 %v2910_v1  ;;  %v804_v4 = vsel %vm802_vm2, %v797_v3, 0  ;;  %s3064_s27 = scalar_lea.vmem %s3473_s16, %s2549_s20  ;;  %s2455_s26 = sshll.u32 %s3500_s22, 2  ;;  %vm798_vm4 = vcmask 31744   ;;  %vm871_vm5 = vcmask 130048  }
  0x14   : > { %2633 = vmatprep.subr.bf16.mxu0 %v2910_v1  ;;  %2629 = vmatpush3.msk.msra.mxu1 %vm646_vm0, %v639_v2  ;;  %s602_s24 = scalar_select %p601_p6, %s2892_s21, 3  ;;  %v2475_v6 = vld [vmem:[%s3461_s4 + $0x2] sm:$0x3]  ;;  %v2471_v18 = vld [vmem:[%s3464_s7] ss:$0 sm:$0xff]  ;;  %v2811_v26 = vld [vmem:[%s3465_s8 + $0x8] sm:$0xff]  }
  0x15   : > { %2630 = vmatprep.mubr.msk.f32.mxu1 %vm2911_vm1, %v2910_v1  ;;  %2639 = vmatprep.subr.bf16.mxu1 %v2910_v1  ;;  %s626_s30 = scalar_lea.vmem %s3485_s3, %s2461_s19  ;;  %s3487_s3 = sld [smem:[#allocation7_spill]]  ;;  %v927_v7 = vsel %vm802_vm2, %v2475_v6, 0  ;;  %v2810_v11 = vld [vmem:[%s3465_s8] sm:$0xff]  }
  0x16   : > { %s3058_s18 = scalar_lea.vmem %s3486_s15, %s2549_s20  ;;  %v640_v5 = vld [vmem:[%s626_s30] sm:$0xff]  ;;  %s604_s29 = sadd.s32 %s2455_s26, %s602_s24 }
  0x17   : > { %2626 = vmatmul.mubr.msk.f32.vlgmr.msra.gmra.mxu0 %vm642_vm3, %v640_v5  ;;  %s2456_s0 = sshll.u32 %s604_s29, 2  ;;  %s2460_s5 = sshll.u32 %s604_s29, 3  ;;  %v2478_v32 = vld [vmem:[%s3464_s7 + $0x1] ss:$0 sm:$0xff]  ;;  %v2472_v37 = vld [vmem:[%s3466_s9] ss:$0 sm:$0xff] }
  0x18   : > { %2634 = vmatpush3.bf16.msra.mxu0 %v804_v4  ;;  %2635 = vmatprep.mubr.msk.bf16.mxu0 %vm2911_vm1, %v2910_v1  ;;  %s622_s22 = scalar_lea.vmem %s3459_s2, %s2460_s5  ;;  %s614_s19 = scalar_lea.vmem %s3458_s1, %s2456_s0  ;;  %v2482_v44 = vld [vmem:[%s3466_s9 + $0x1] ss:$0 sm:$0xff] }
  0x19   : > { %2645 = vmatprep.subr.bf16.mxu0 %v2910_v1  ;;  %v638_v8 = vld [vmem:[%s622_s22] sm:$0xff] }
  0x1a   : > { %2631 = vmatmul.mubr.msk.f32.vlgmr.msra.gmra.mxu1 %vm642_vm3, %v638_v8  ;;  %v916_v10 = vld [vmem:[%s614_s19] sm:$0xf] }
  0x1b   : > { %s606_s15 = scalar_lea.vmem %s3487_s3, %s2456_s0  ;;  %2641 = vmatprep.mubr.msk.bf16.mxu1 %vm2911_vm1, %v2910_v1  ;;  %2640 = vmatpush3.bf16.msra.mxu1 %v2810_v11  ;;  %s2912_s0 = smov 112  }
  0x1c   : > { %v796_v9 = vld [vmem:[%s606_s15] sm:$0xf]  ;;  %2651 = vmatprep.subr.bf16.mxu1 %v2910_v1 }
  0x1d   : > { %2636 = vmatmul.mubr.msk.bf16.vlgmr.msra.gmra.mxu0 %vm798_vm4, %v796_v9 }
  0x1e   : > { %2646 = vmatpush3.bf16.msra.mxu0 %v927_v7  ;;  %2647 = vmatprep.mubr.msk.bf16.mxu0 %vm2911_vm1, %v2910_v1 }
  0x25   : > { %2648 = vmatmul.mubr.msk.bf16.vlgmr.msra.gmra.mxu0 %vm798_vm4, %v916_v10 }
  0xd7   : > { %v716_v12 = vpop.f32.mrf.mxu0 }
  0xd9   : > { %v2627_v13 = vpop.f32.mrf.mxu0 }
  0xda   : > { %v792_v14 = vpop.f32.mrf.mxu1 }
  0xdb   : > { %v793_v16 = vadd.f32 %v792_v14, %v716_v12 }
  0xdc   : > { %v2632_v17 = vpop.f32.mrf.mxu1 }
  0xdd   : > { %v840_v15 = vpop.f32.mrf.mxu0  ;;  %920 = vrot.lane.b32.xlu0 %v793_v16, %s2912_s0 }
  0xde   : > { %v841_v20 = vadd.f32 %v840_v15, %v793_v16 }
  0xdf   : > { %v2637_v19 = vpop.f32.mrf.mxu0 }
  0xe0   : > { %v853_v22 = vadd.f32 %v2471_v18, %v841_v20 }
  0xe1   : > { %v843_v21 = vpop.f32.mrf.mxu0 }
  0xe2   : > { %v854_v24 = vmax.f32 %v853_v22, 0.0 }
  0xe3   : > { %v2638_v23 = vpop.f32.mrf.mxu0 }
  0xe4   : > { %v855_v27 = vpack.c.bf16 %v854_v24, %v854_v24 }
  0xe5   : > { %v963_v25 = vpop.f32.mrf.mxu0 }
  0xe6   : > { %2642 = vmatmul.mubr.msk.bf16.vlgmr.msra.gmra.mxu1 %vm871_vm5, %v855_v27 }
  0xe7   : > { %v2649_v28 = vpop.f32.mrf.mxu0  ;;  %2652 = vmatpush3.bf16.msra.mxu1 %v2811_v26  ;;  %2653 = vmatprep.mubr.msk.bf16.mxu1 %vm2911_vm1, %v2910_v1 }
  0xe9   : > { %v966_v29 = vpop.f32.mrf.mxu0 }
  0xeb   : > { %v2650_v30 = vpop.f32.mrf.mxu0 }
 0x14f   : > { %v921_v31 = vpop.permute.xlu0 %920 }
 0x150   : > { %v964_v33 = vadd.f32 %v963_v25, %v921_v31 }
 0x152   : > { %v977_v34 = vadd.f32 %v2478_v32, %v964_v33 }
 0x154   : > { %v978_v35 = vmax.f32 %v977_v34, 0.0 }
 0x156   : > { %v979_v36 = vpack.c.bf16 %v978_v35, %v978_v35 }
 0x158   : > { %2654 = vmatmul.mubr.msk.bf16.vlgmr.msra.gmra.mxu1 %vm871_vm5, %v979_v36 }
 0x1a6   : > { %v909_v38 = vpop.f32.mrf.mxu1 }
 0x1a7   : > { %v910_v39 = vadd.f32 %v2472_v37, %v909_v38 }
 0x1a8   : > { %v2643_v40 = vpop.f32.mrf.mxu1 }
 0x1a9   : > { %v915_v41 = vmax.f32 %v910_v39, 0.0 }
 0x1aa   : > { %v912_v42 = vpop.f32.mrf.mxu1 }
 0x1ac   : > { %v2644_v43 = vpop.f32.mrf.mxu1 }
 0x218   : > { %v1034_v45 = vpop.f32.mrf.mxu1 }
 0x219   : > { %v1035_v46 = vadd.f32 %v2482_v44, %v1034_v45 }
 0x21a   : > { %v2655_v47 = vpop.f32.mrf.mxu1  ;;  %1044 = sbr.rel (%p2485_p7) target bundleno = 545 (0x221), region = 84 }
 0x21b   : > { %v1040_v48 = vmax.f32 %v1035_v46, 0.0 }
 0x21c   : > { %v1037_v49 = vpop.f32.mrf.mxu1 }
 0x21e   : > { %v2656_v50 = vpop.f32.mrf.mxu1 }
 0x21f   : > { %vm1045_vm6 = vcmask 261120   ;;  %v2913_v51 = vmov -inf  }
 0x220   : > { %1046 = vst.msk [vmem:[#allocation2] sm:$0xff] %vm1045_vm6, %v2913_v51  ;;  %1047 = vst.msk [vmem:[#allocation3] sm:$0xff] %vm1045_vm6, %v2913_v51 }
 0x221 PF: > { %vm1050_vm7 = vcmask 261120   ;;  %p2486_p8 = scmp.ne.s32.totalorder %s2892_s21, 3 }
 0x226   : > { %1058 = sbr.rel (%p2486_p8) target bundleno = 1974 (0x7b6), region = 88 }
 0x227   : > { %v1048_v52 = vld [vmem:[#allocation2] sm:$0xff]  ;;  %v1052_v53 = vld [vmem:[#allocation3] sm:$0xff] }
 0x228   : > { %v1049_v54 = vmax.f32 %v1048_v52, %v915_v41  ;;  %v1053_v55 = vmax.f32 %v1052_v53, %v1040_v48 }
 0x22a   : > { %1051 = vst.msk [vmem:[#allocation2] sm:$0xff] %vm1050_vm7, %v1049_v54  ;;  %1054 = vst.msk [vmem:[#allocation3] sm:$0xff] %vm1050_vm7, %v1053_v55 }
 0x22b   : > { %v2914_v57 = vmov 0.0   ;;  %vm1125_vm8 = vcmask 64512   ;;  %vm2915_vm9 = vmmov 0   ;;  %v1155_v23 = vld [vmem:[%s3467_s10] sm:$0xff] }
 0x22c   : > { %2657 = vmatprep.subr.mxu0 %v2914_v57  ;;  %2665 = vmatprep.mubr.msk.f32.mxu0 %vm2915_vm9, %v2914_v57  ;;  %v1231_v47 = vld [vmem:[%s3469_s12] sm:$0xff] }
 0x22d   : > { %2670 = vmatprep.mubr.msk.f32.mxu1 %vm1125_vm8, %v1231_v47  ;;  %v1156_v51 = vld [vmem:[%s3468_s11] sm:$0xff]  ;;  %v2524_v47 = vld [vmem:[%s3470_s13 + $0x48] sm:$0xff] }
 0x231   : > { %v1059_v56 = vld [vmem:[#allocation2] sm:$0xff]  ;;  %v1092_v19 = vld [vmem:[#allocation3] sm:$0xff] }
 0x232   : > { %1060 = vxpose.xlu0.b32.start.end [1/1] (short) (narrow) %v1059_v56, 32  ;;  %v1232_v56 = vld [vmem:[%s3469_s12 + $0x8] sm:$0xff] }
 0x2ae   : > { %v3117_v58 = vpop.trf.xlu0 }
 0x2af   : > { %v1126_v62 = vsel %vm1125_vm8, %v3117_v58, 0.0 }
 0x2b2   : > { %v3119_v59 = vpop.trf.xlu0 }
 0x2b3   : > { %v1127_v60 = vsel %vm1125_vm8, %v3119_v59, 0.0 }
 0x2b4   : > { %v1128_v0 = vadd.f32 %v1127_v60, %v1126_v62  ;;  %v1233_v60 = vld [vmem:[%s3469_s12 + $0x10] sm:$0xff]  ;;  %v1234_v62 = vld [vmem:[%s3469_s12 + $0x18] sm:$0xff] }
 0x2b6   : > { %v3123_v61 = vpop.trf.xlu0 }
 0x2b7   : > { %v1129_v63 = vsel %vm1125_vm8, %v3123_v61, 0.0 }
 0x2b8   : > { %v1130_v1 = vadd.f32 %v1129_v63, %v1128_v0 }
 0x2ba   : > { %v3129_v2 = vpop.trf.xlu0 }
 0x2bb   : > { %v1131_v3 = vsel %vm1125_vm8, %v3129_v2, 0.0 }
 0x2bc   : > { %v1132_v4 = vadd.f32 %v1131_v3, %v1130_v1  ;;  %v2496_v3 = vld [vmem:[%s3467_s10 + $0x8] sm:$0xff] }
 0x2be   : > { %v1133_v5 = vrot.slane %v1132_v4, 4 }
 0x2c0   : > { %v1134_v6 = vadd.f32 %v1133_v5, %v1132_v4  ;;  %v2499_v5 = vld [vmem:[%s3469_s12 + $0x20] sm:$0xff] }
 0x2c2   : > { %v1135_v7 = vrot.slane %v1134_v6, 2 }
 0x2c4   : > { %v1136_v8 = vadd.f32 %v1135_v7, %v1134_v6  ;;  %v2916_v6 = vmov 0  }
 0x2c5   : > { %2812 = vset.pattern.permute.xlu0 %v2916_v6 }
 0x2c6   : > { %v1137_v9 = vrot.slane %v1136_v8, 1 }
 0x2c8   : > { %v1138_v10 = vadd.f32 %v1137_v9, %v1136_v8 }
 0x2ca   : > { %v1142_v11 = vmul.f32 %v1138_v10, %v3129_v2  ;;  %v1141_v12 = vmul.f32 %v1138_v10, %v3123_v61  ;;  %v1140_v15 = vmul.f32 %v1138_v10, %v3119_v59  ;;  %v1139_v17 = vmul.f32 %v1138_v10, %v3117_v58 }
 0x2cc   : > { %v1152_v13 = vsel %vm1125_vm8, %v1142_v11, 0.0  ;;  %v1149_v14 = vsel %vm1125_vm8, %v1141_v12, 0.0  ;;  %v1146_v16 = vsel %vm1125_vm8, %v1140_v15, 0.0  ;;  %v1143_v18 = vsel %vm1125_vm8, %v1139_v17, 0.0 }
 0x2cd   : > { %1153 = vadd.xlane.f32.xlu0 %v1152_v13  ;;  %1150 = vadd.xlane.f32.xlu1 %v1149_v14  ;;  %v2497_v14 = vld [vmem:[%s3468_s11 + $0x8] sm:$0xff] }
 0x2d1   : > { %1147 = vadd.xlane.f32.xlu1 %v1146_v16 }
 0x2d5   : > { %1144 = vadd.xlane.f32.xlu1 %v1143_v18 }
 0x308   : > { %1093 = vxpose.xlu1.b32.start.end [1/1] (short) (narrow) %v1092_v19, 32 }
 0x326   : > { %2813 = vset.pattern.permute.xlu1 %v2916_v6 }
 0x356   : > { %v1154_v20 = vpop.xlane.xlu0 %1153  ;;  %v1151_v21 = vpop.xlane.xlu1 %1150 }
 0x357   : > { %2658 = vmatpush3.msra.mxu0 %v1154_v20  ;;  %v2500_v20 = vld [vmem:[%s3469_s12 + $0x28] sm:$0xff] }
 0x358   : > { %2659 = vmatprep.subr.mxu0 %v2914_v57 }
 0x359   : > { %2660 = vmatpush3.msra.mxu0 %v1151_v21 }
 0x35a   : > { %2661 = vmatprep.subr.mxu0 %v2914_v57  ;;  %v1148_v22 = vpop.xlane.xlu1 %1147 }
 0x35b   : > { %2662 = vmatpush3.msra.mxu0 %v1148_v22 }
 0x35c   : > { %2663 = vmatprep.subr.mxu0 %v2914_v57 }
 0x35e   : > { %v1145_v24 = vpop.xlane.xlu1 %1144 }
 0x35f   : > { %2664 = vmatpush3.msra.mxu0 %v1145_v24 }
 0x360   : > { %2666 = vmatmul.mubr.msk.f32.vlgmr.msra.gmra.mxu0 %vm1050_vm7, %v1155_v23  ;;  %v2501_v23 = vld [vmem:[%s3469_s12 + $0x30] sm:$0xff] }
 0x361   : > { %2689 = vmatprep.mubr.msk.f32.mxu0 %vm1125_vm8, %v2499_v5 }
 0x384   : > { %v3150_v25 = vpop.trf.xlu1 }
 0x385   : > { %v1380_v29 = vsel %vm1125_vm8, %v3150_v25, 0.0 }
 0x388   : > { %v3152_v26 = vpop.trf.xlu1 }
 0x389   : > { %v1381_v27 = vsel %vm1125_vm8, %v3152_v26, 0.0 }
 0x38a   : > { %v1382_v31 = vadd.f32 %v1381_v27, %v1380_v29 }
 0x38c   : > { %v3156_v28 = vpop.trf.xlu1 }
 0x38d   : > { %v1383_v30 = vsel %vm1125_vm8, %v3156_v28, 0.0 }
 0x38e   : > { %v1384_v32 = vadd.f32 %v1383_v30, %v1382_v31  ;;  %v2502_v30 = vld [vmem:[%s3469_s12 + $0x38] sm:$0xff] }
 0x390   : > { %v3162_v33 = vpop.trf.xlu1 }
 0x391   : > { %v1385_v34 = vsel %vm1125_vm8, %v3162_v33, 0.0 }
 0x392   : > { %v1386_v35 = vadd.f32 %v1385_v34, %v1384_v32 }
 0x394   : > { %v1387_v36 = vrot.slane %v1386_v35, 4 }
 0x396   : > { %v1388_v37 = vadd.f32 %v1387_v36, %v1386_v35 }
 0x398   : > { %v1389_v38 = vrot.slane %v1388_v37, 2 }
 0x39a   : > { %v1390_v39 = vadd.f32 %v1389_v38, %v1388_v37  ;;  %v1774_v38 = vld [vmem:[%s3471_s14] sm:$0xff] }
 0x39c   : > { %v1391_v40 = vrot.slane %v1390_v39, 1 }
 0x39e   : > { %v1392_v41 = vadd.f32 %v1391_v40, %v1390_v39 }
 0x3a0   : > { %v1396_v42 = vmul.f32 %v1392_v41, %v3162_v33  ;;  %v1395_v43 = vmul.f32 %v1392_v41, %v3156_v28  ;;  %v1394_v46 = vmul.f32 %v1392_v41, %v3152_v26  ;;  %v1393_v49 = vmul.f32 %v1392_v41, %v3150_v25 }
 0x3a2   : > { %v1406_v44 = vsel %vm1125_vm8, %v1396_v42, 0.0  ;;  %v1403_v45 = vsel %vm1125_vm8, %v1395_v43, 0.0  ;;  %v1400_v48 = vsel %vm1125_vm8, %v1394_v46, 0.0  ;;  %v1397_v50 = vsel %vm1125_vm8, %v1393_v49, 0.0  ;;  %v2523_v46 = vld [vmem:[%s3470_s13 + $0x40] sm:$0xff]  ;;  %v2526_v49 = vld [vmem:[%s3470_s13 + $0x58] sm:$0xff] }
 0x3a3   : > { %1407 = vadd.xlane.f32.xlu0 %v1406_v44  ;;  %1404 = vadd.xlane.f32.xlu1 %v1403_v45  ;;  %v1775_v45 = vld [vmem:[%s3471_s14 + $0x8] sm:$0xff] }
 0x3a7   : > { %1401 = vadd.xlane.f32.xlu0 %v1400_v48  ;;  %v2525_v48 = vld [vmem:[%s3470_s13 + $0x50] sm:$0xff] }
 0x3ab   : > { %1398 = vadd.xlane.f32.xlu0 %v1397_v50  ;;  %v2527_v50 = vld [vmem:[%s3470_s13 + $0x60] sm:$0xff] }
 0x420   : > { %v1226_v52 = vpop.f32.mrf.mxu0 }
 0x421   : > { %v1227_v53 = vadd.f32 %v1226_v52, %v1156_v51  ;;  %v2528_v51 = vld [vmem:[%s3470_s13 + $0x68] sm:$0xff]  ;;  %v2529_v52 = vld [vmem:[%s3470_s13 + $0x70] sm:$0xff] }
 0x422   : > { %v2667_v54 = vpop.f32.mrf.mxu0 }
 0x423   : > { %v1230_v55 = vmax.f32 %v1227_v53, 0.0  ;;  %v2530_v53 = vld [vmem:[%s3470_s13 + $0x78] sm:$0xff] }
 0x425   : > { %2668 = vmatprep.subr.mxu1 %v1230_v55 }
 0x426   : > { %2669 = vmatpush3.msra.mxu1 %v1230_v55 }
 0x427   : > { %2671 = vmatmul.mubr.msk.f32.vlgmr.msra.gmra.mxu1 %vm1125_vm8, %v1232_v56  ;;  %2676 = vmatprep.subr.mxu1 %v2914_v57 }
 0x428   : > { %2673 = vmatprep.mubr.msk.f32.mxu1 %vm1125_vm8, %v1233_v60 }
 0x42b   : > { %2674 = vmatmul.mubr.msk.f32.gmra.mxu1 %vm1125_vm8, %v1234_v62 }
 0x42c   : > { %v1408_v63 = vpop.xlane.xlu0 %1407  ;;  %2684 = vmatprep.mubr.msk.f32.mxu1 %vm2915_vm9, %v2914_v57  ;;  %v1405_v0 = vpop.xlane.xlu1 %1404 }
 0x42d   : > { %2677 = vmatpush3.msra.mxu1 %v1408_v63 }
 0x42e   : > { %2678 = vmatprep.subr.mxu1 %v2914_v57 }
 0x42f   : > { %2679 = vmatpush3.msra.mxu1 %v1405_v0 }
 0x430   : > { %2680 = vmatprep.subr.mxu1 %v2914_v57  ;;  %v1402_v1 = vpop.xlane.xlu0 %1401 }
 0x431   : > { %2681 = vmatpush3.msra.mxu1 %v1402_v1 }
 0x432   : > { %2682 = vmatprep.subr.mxu1 %v2914_v57 }
 0x434   : > { %v1399_v4 = vpop.xlane.xlu0 %1398 }
 0x435   : > { %2683 = vmatpush3.msra.mxu1 %v1399_v4 }
 0x436   : > { %2685 = vmatmul.mubr.msk.f32.vlgmr.msra.gmra.mxu1 %vm1050_vm7, %v2496_v3 }
 0x4e7   : > { %v2672_v7 = vpop.f32.mrf.mxu1 }
 0x4e8   : > { %v2493_v8 = vmul.f32 -1.442695, %v2672_v7 }
 0x4e9   : > { %v1313_v57 = vpop.f32.mrf.mxu1 }
 0x4ea   : > { %2814 = vpow2.f32 %v2493_v8  ;;  %v2492_v12 = vmul.f32 -1.442695, %v1313_v57 }
 0x4eb   : > { %v2675_v9 = vpop.f32.mrf.mxu1 }
 0x4ec   : > { %v2495_v10 = vmul.f32 -1.442695, %v2675_v9 }
 0x4ed   : > { %v1323_v11 = vpop.f32.mrf.mxu1 }
 0x4ee   : > { %2816 = vpow2.f32 %v2495_v10  ;;  %v2494_v13 = vmul.f32 -1.442695, %v1323_v11 }
 0x4f0   : > { %2818 = vpow2.f32 %v2494_v13  ;;  %v1637_v13 = vld [vmem:[%s3470_s13] sm:$0xff] }
 0x4f1   : > { %2820 = vpow2.f32 %v2492_v12  ;;  %2703 = vmatprep.mubr.msk.f32.mxu1 %vm1050_vm7, %v1637_v13 }
 0x4f6   : > { %v1482_v15 = vpop.f32.mrf.mxu1 }
 0x4f7   : > { %v1483_v16 = vadd.f32 %v2497_v14, %v1482_v15  ;;  %v2815_v17 = vpop.eup %2814 }
 0x4f8   : > { %v2686_v18 = vpop.f32.mrf.mxu1  ;;  %v1345_v22 = vadd.f32 1.0, %v2815_v17 }
 0x4f9   : > { %v1486_v19 = vmax.f32 %v1483_v16, 0.0 }
 0x4fb   : > { %v2817_v21 = vpop.eup %2816  ;;  %2687 = vmatprep.subr.mxu0 %v1486_v19 }
 0x4fc   : > { %v1347_v24 = vadd.f32 1.0, %v2817_v21  ;;  %2688 = vmatpush3.msra.mxu0 %v1486_v19 }
 0x4fd   : > { %v2819_v27 = vpop.eup %2818  ;;  %2690 = vmatmul.mubr.msk.f32.vlgmr.msra.gmra.mxu0 %vm1125_vm8, %v2500_v20 }
 0x4fe   : > { %2822 = vrcp.f32 %v1347_v24  ;;  %v1346_v29 = vadd.f32 1.0, %v2819_v27  ;;  %2692 = vmatprep.mubr.msk.f32.mxu0 %vm1125_vm8, %v2501_v23  ;;  %v2821_v31 = vpop.eup %2820 }
 0x4ff   : > { %2824 = vrcp.f32 %v1345_v22  ;;  %v1344_v32 = vadd.f32 1.0, %v2821_v31 }
 0x500   : > { %2826 = vrcp.f32 %v1346_v29 }
 0x501   : > { %2693 = vmatmul.mubr.msk.f32.gmra.mxu0 %vm1125_vm8, %v2502_v30  ;;  %2828 = vrcp.f32 %v1344_v32 }
 0x502   : > { %2723 = vmatprep.mubr.msk.f32.mxu0 %vm1050_vm7, %v1774_v38 }
 0x50b   : > { %v2823_v34 = vpop.eup %2822 }
 0x50c   : > { %v2825_v35 = vpop.eup %2824  ;;  %1373 = vperm.xlu0 %2812, %v2823_v34  }
 0x50d   : > { %v2827_v36 = vpop.eup %2826 }
 0x50e   : > { %1368 = vperm.xlu1 %2813, %v2827_v36   ;;  %v2829_v37 = vpop.eup %2828 }
 0x510   : > { %1363 = vperm.xlu0 %2812, %v2825_v35  }
 0x514   : > { %1358 = vperm.xlu0 %2812, %v2829_v37  }
 0x587   : > { %v1374_v39 = vpop.permute.xlu0 %1373 }
 0x588   : > { %v3227_v40 = vmul.f32 %v1374_v39, %v3129_v2 }
 0x589   : > { %v1369_v41 = vpop.permute.xlu1 %1368 }
 0x58a   : > { %v3230_v42 = vmul.f32 %v1369_v41, %v3123_v61  ;;  %2715 = vmatprep.subr.mxu0 %v3227_v40  ;;  %v1638_v41 = vld [vmem:[%s3470_s13 + $0x8] sm:$0xff] }
 0x58b   : > { %2716 = vmatpush3.msra.mxu0 %v3227_v40  ;;  %v1364_v43 = vpop.permute.xlu0 %1363 }
 0x58c   : > { %v3235_v44 = vmul.f32 %v1364_v43, %v3119_v59  ;;  %2717 = vmatprep.subr.mxu0 %v3230_v42  ;;  %v1776_v59 = vld [vmem:[%s3471_s14 + $0x10] sm:$0xff] }
 0x58d   : > { %2718 = vmatpush3.msra.mxu0 %v3230_v42 }
 0x58e   : > { %2719 = vmatprep.subr.mxu0 %v3235_v44 }
 0x58f   : > { %2720 = vmatpush3.msra.mxu0 %v3235_v44  ;;  %v1359_v2 = vpop.permute.xlu0 %1358 }
 0x590   : > { %v3242_v61 = vmul.f32 %v1359_v2, %v3117_v58  ;;  %v1777_v58 = vld [vmem:[%s3471_s14 + $0x18] sm:$0xff]  ;;  %v1641_v2 = vld [vmem:[%s3470_s13 + $0x20] sm:$0xff] }
 0x592   : > { %2721 = vmatprep.subr.mxu0 %v3242_v61 }
 0x593   : > { %2722 = vmatpush3.msra.mxu0 %v3242_v61 }
 0x594   : > { %2729 = vmatprep.subr.mxu0 %v3227_v40  ;;  %2724 = vmatmul.mubr.msk.f32.vlgmr.msra.gmra.mxu0 %vm1050_vm7, %v1775_v45 }
 0x595   : > { %2730 = vmatpush3.msra.mxu0 %v3227_v40  ;;  %2726 = vmatprep.mubr.msk.f32.mxu0 %vm1050_vm7, %v1776_v59  ;;  %v1642_v59 = vld [vmem:[%s3470_s13 + $0x28] sm:$0xff] }
 0x596   : > { %2731 = vmatprep.subr.mxu0 %v3230_v42 }
 0x597   : > { %2732 = vmatpush3.msra.mxu0 %v3230_v42 }
 0x598   : > { %2733 = vmatprep.subr.mxu0 %v3235_v44  ;;  %2727 = vmatmul.mubr.msk.f32.gmra.mxu0 %vm1050_vm7, %v1777_v58  ;;  %v1643_v58 = vld [vmem:[%s3470_s13 + $0x30] sm:$0xff] }
 0x599   : > { %2734 = vmatpush3.msra.mxu0 %v3235_v44  ;;  %2737 = vmatprep.mubr.msk.f32.mxu0 %vm1050_vm7, %v2523_v46 }
 0x59a   : > { %2735 = vmatprep.subr.mxu0 %v3242_v61 }
 0x59b   : > { %2736 = vmatpush3.msra.mxu0 %v3242_v61 }
 0x59c   : > { %2738 = vmatmul.mubr.msk.f32.vlgmr.msra.gmra.mxu0 %vm1050_vm7, %v2524_v47  ;;  %v1644_v47 = vld [vmem:[%s3470_s13 + $0x38] sm:$0xff] }
 0x59d   : > { %2740 = vmatprep.mubr.msk.f32.mxu0 %vm1050_vm7, %v2525_v48  ;;  %v2539_v48 = vld [vmem:[%s3471_s14 + $0x20] sm:$0xff] }
 0x5a0   : > { %2741 = vmatmul.mubr.msk.f32.gmra.mxu0 %vm1050_vm7, %v2526_v49 }
 0x5a1   : > { %2743 = vmatprep.mubr.msk.f32.mxu0 %vm1050_vm7, %v2527_v50 }
 0x5a4   : > { %2744 = vmatmul.mubr.msk.f32.gmra.mxu0 %vm1050_vm7, %v2528_v51  ;;  %v2540_v51 = vld [vmem:[%s3471_s14 + $0x28] sm:$0xff] }
 0x5a5   : > { %2746 = vmatprep.mubr.msk.f32.mxu0 %vm1050_vm7, %v2529_v52  ;;  %v2541_v52 = vld [vmem:[%s3471_s14 + $0x30] sm:$0xff] }
 0x5a8   : > { %2747 = vmatmul.mubr.msk.f32.gmra.mxu0 %vm1050_vm7, %v2530_v53 }
 0x5bd   : > { %v2691_v54 = vpop.f32.mrf.mxu0 }
 0x5be   : > { %v2508_v55 = vmul.f32 -1.442695, %v2691_v54 }
 0x5bf   : > { %v1570_v56 = vpop.f32.mrf.mxu0 }
 0x5c0   : > { %2830 = vpow2.f32 %v2508_v55  ;;  %v2507_v0 = vmul.f32 -1.442695, %v1570_v56  ;;  %v2542_v55 = vld [vmem:[%s3471_s14 + $0x38] sm:$0xff] }
 0x5c1   : > { %v2694_v60 = vpop.f32.mrf.mxu0 }
 0x5c2   : > { %v2510_v62 = vmul.f32 -1.442695, %v2694_v60 }
 0x5c3   : > { %v1580_v63 = vpop.f32.mrf.mxu0 }
 0x5c4   : > { %2832 = vpow2.f32 %v2510_v62  ;;  %v2509_v1 = vmul.f32 -1.442695, %v1580_v63 }
 0x5c6   : > { %2834 = vpow2.f32 %v2509_v1 }
 0x5c7   : > { %2836 = vpow2.f32 %v2507_v0 }
 0x5cd   : > { %v2831_v3 = vpop.eup %2830 }
 0x5ce   : > { %v1602_v4 = vadd.f32 1.0, %v2831_v3 }
 0x5d0   : > { %2838 = vrcp.f32 %v1602_v4 }
 0x5d1   : > { %v2833_v5 = vpop.eup %2832 }
 0x5d2   : > { %v1604_v6 = vadd.f32 1.0, %v2833_v5 }
 0x5d3   : > { %v2835_v7 = vpop.eup %2834 }
 0x5d4   : > { %2840 = vrcp.f32 %v1604_v6  ;;  %v1603_v8 = vadd.f32 1.0, %v2835_v7  ;;  %v2837_v57 = vpop.eup %2836 }
 0x5d5   : > { %v1601_v9 = vadd.f32 1.0, %v2837_v57 }
 0x5d6   : > { %2842 = vrcp.f32 %v1603_v8 }
 0x5d7   : > { %2844 = vrcp.f32 %v1601_v9 }
 0x5dd   : > { %v2839_v10 = vpop.eup %2838 }
 0x5de   : > { %1620 = vperm.xlu1 %2813, %v2839_v10  }
 0x5e1   : > { %v2841_v11 = vpop.eup %2840 }
 0x5e2   : > { %1630 = vperm.xlu0 %2812, %v2841_v11  }
 0x5e3   : > { %v2843_v12 = vpop.eup %2842 }
 0x5e4   : > { %v2845_v14 = vpop.eup %2844 }
 0x5e6   : > { %1625 = vperm.xlu0 %2812, %v2843_v12  }
 0x5ea   : > { %1615 = vperm.xlu0 %2812, %v2845_v14  }
 0x654   : > { %v3302_v15 = vpop.f32.mrf.mxu0 }
 0x656   : > { %v3304_v16 = vpop.f32.mrf.mxu0 }
 0x658   : > { %v3306_v17 = vpop.f32.mrf.mxu0 }
 0x659   : > { %v1621_v30 = vpop.permute.xlu1 %1620 }
 0x65a   : > { %v3308_v18 = vpop.f32.mrf.mxu0  ;;  %v3323_v36 = vmul.f32 %v1621_v30, %v3152_v26  ;;  %v1639_v26 = vld [vmem:[%s3470_s13 + $0x10] sm:$0xff] }
 0x65c   : > { %v2739_v19 = vpop.f32.mrf.mxu0 }
 0x65d   : > { %v1631_v20 = vpop.permute.xlu0 %1630  ;;  %v2207_v21 = vsel %vm1125_vm8, %v2739_v19, 0.0 }
 0x65e   : > { %v3312_v22 = vmul.f32 %v1631_v20, %v3162_v33  ;;  %v2065_v23 = vpop.f32.mrf.mxu0 }
 0x65f   : > { %v2206_v24 = vsel %vm1125_vm8, %v2065_v23, 0.0 }
 0x660   : > { %2695 = vmatprep.subr.mxu1 %v3312_v22  ;;  %v2208_v27 = vadd.f32 %v2207_v21, %v2206_v24  ;;  %v2742_v29 = vpop.f32.mrf.mxu0 }
 0x661   : > { %2696 = vmatpush3.msra.mxu1 %v3312_v22  ;;  %v1626_v31 = vpop.permute.xlu0 %1625  ;;  %v2211_v35 = vsel %vm1125_vm8, %v2742_v29, 0.0 }
 0x662   : > { %v3318_v32 = vmul.f32 %v1626_v31, %v3156_v28  ;;  %v2075_v34 = vpop.f32.mrf.mxu0 }
 0x663   : > { %v2209_v33 = vsel %vm1125_vm8, %v2075_v34, 0.0 }
 0x664   : > { %2697 = vmatprep.subr.mxu1 %v3318_v32  ;;  %v2210_v37 = vadd.f32 %v2209_v33, %v2208_v27  ;;  %v2745_v50 = vpop.f32.mrf.mxu0 }
 0x665   : > { %2698 = vmatpush3.msra.mxu1 %v3318_v32  ;;  %v1616_v38 = vpop.permute.xlu0 %1615 }
 0x666   : > { %v3328_v39 = vmul.f32 %v1616_v38, %v3150_v25  ;;  %2699 = vmatprep.subr.mxu1 %v3323_v36  ;;  %v2212_v28 = vadd.f32 %v2211_v35, %v2210_v37  ;;  %v1640_v25 = vld [vmem:[%s3470_s13 + $0x18] sm:$0xff]  ;;  %v2085_v54 = vpop.f32.mrf.mxu0 }
 0x667   : > { %2700 = vmatpush3.msra.mxu1 %v3323_v36 }
 0x668   : > { %2701 = vmatprep.subr.mxu1 %v3328_v39  ;;  %v2213_v43 = vrot.slane %v2212_v28, 4  ;;  %v2748_v60 = vpop.f32.mrf.mxu0 }
 0x669   : > { %2702 = vmatpush3.msra.mxu1 %v3328_v39 }
 0x66a   : > { %2704 = vmatmul.mubr.msk.f32.vlgmr.msra.gmra.mxu1 %vm1050_vm7, %v1638_v41  ;;  %2749 = vmatprep.subr.mxu1 %v3312_v22  ;;  %v2214_v45 = vadd.f32 %v2213_v43, %v2212_v28  ;;  %v2095_v0 = vpop.f32.mrf.mxu0 }
 0x66b   : > { %2750 = vmatpush3.msra.mxu1 %v3312_v22  ;;  %2706 = vmatprep.mubr.msk.f32.mxu1 %vm1050_vm7, %v1639_v26 }
 0x66c   : > { %2751 = vmatprep.subr.mxu1 %v3318_v32  ;;  %v2215_v46 = vrot.slane %v2214_v45, 2 }
 0x66d   : > { %2752 = vmatpush3.msra.mxu1 %v3318_v32 }
 0x66e   : > { %2707 = vmatmul.mubr.msk.f32.gmra.mxu1 %vm1050_vm7, %v1640_v25  ;;  %2753 = vmatprep.subr.mxu1 %v3323_v36  ;;  %v2216_v49 = vadd.f32 %v2215_v46, %v2214_v45 }
 0x66f   : > { %2754 = vmatpush3.msra.mxu1 %v3323_v36  ;;  %2709 = vmatprep.mubr.msk.f32.mxu1 %vm1050_vm7, %v1641_v2 }
 0x670   : > { %2755 = vmatprep.subr.mxu1 %v3328_v39  ;;  %v2217_v53 = vrot.slane %v2216_v49, 1 }
 0x671   : > { %2756 = vmatpush3.msra.mxu1 %v3328_v39 }
 0x672   : > { %2710 = vmatmul.mubr.msk.f32.gmra.mxu1 %vm1050_vm7, %v1642_v59  ;;  %v2218_v56 = vadd.f32 %v2217_v53, %v2216_v49 }
 0x673   : > { %2712 = vmatprep.mubr.msk.f32.mxu1 %vm1050_vm7, %v1643_v58 }
 0x674   : > { %v2220_v62 = vmul.f32 %v2745_v50, %v2218_v56  ;;  %v2219_v63 = vmul.f32 %v2218_v56, %v2085_v54  ;;  %v2221_v4 = vmul.f32 %v2218_v56, %v2095_v0  ;;  %v2222_v6 = vmul.f32 %v2748_v60, %v2218_v56 }
 0x676   : > { %2713 = vmatmul.mubr.msk.f32.gmra.mxu1 %vm1050_vm7, %v1644_v47  ;;  %v2224_v1 = vsel %vm1125_vm8, %v2220_v62, 0.0  ;;  %v2223_v3 = vsel %vm1125_vm8, %v2219_v63, 0.0  ;;  %v2226_v7 = vsel %vm1125_vm8, %v2221_v4, 0.0  ;;  %v2228_v57 = vsel %vm1125_vm8, %v2222_v6, 0.0 }
 0x677   : > { %2757 = vmatprep.mubr.msk.f32.mxu1 %vm1050_vm7, %v2539_v48  ;;  %v2225_v5 = vadd.f32 %v2224_v1, %v2223_v3 }
 0x679   : > { %v2227_v8 = vadd.f32 %v2226_v7, %v2225_v5 }
 0x67a   : > { %2758 = vmatmul.mubr.msk.f32.vlgmr.msra.gmra.mxu1 %vm1050_vm7, %v2540_v51 }
 0x67b   : > { %2760 = vmatprep.mubr.msk.f32.mxu1 %vm1050_vm7, %v2541_v52  ;;  %v2229_v9 = vadd.f32 %v2228_v57, %v2227_v8 }
 0x67d   : > { %v2230_v10 = vrot.slane %v2229_v9, 4 }
 0x67e   : > { %2761 = vmatmul.mubr.msk.f32.gmra.mxu1 %vm1050_vm7, %v2542_v55 }
 0x67f   : > { %v2231_v11 = vadd.f32 %v2230_v10, %v2229_v9 }
 0x681   : > { %v2232_v12 = vrot.slane %v2231_v11, 2 }
 0x683   : > { %v2233_v13 = vadd.f32 %v2232_v12, %v2231_v11 }
 0x685   : > { %v2234_v14 = vrot.slane %v2233_v13, 1 }
 0x687   : > { %v2235_v19 = vadd.f32 %v2234_v14, %v2233_v13 }
 0x689   : > { %v2236_v20 = vadd.f32 1e-09, %v2235_v19 }
 0x68b   : > { %2846 = vrcp.f32 %v2236_v20 }
 0x698   : > { %v2847_v21 = vpop.eup %2846 }
 0x699   : > { %v2238_v23 = vmul.f32 %v2847_v21, %v2219_v63  ;;  %v2239_v24 = vmul.f32 %v2847_v21, %v2220_v62  ;;  %v2240_v27 = vmul.f32 %v2847_v21, %v2221_v4  ;;  %v2241_v29 = vmul.f32 %v2847_v21, %v2222_v6 }
 0x69b   : > { %v2242_v30 = vsel %vm1125_vm8, %v2238_v23, -inf  ;;  %v2243_v31 = vsel %vm1125_vm8, %v2239_v24, -inf  ;;  %v2244_v34 = vsel %vm1125_vm8, %v2240_v27, -inf  ;;  %v2245_v35 = vsel %vm1125_vm8, %v2241_v29, -inf }
 0x69c   : > { %v2246_v33 = vmax.f32 %v2242_v30, %v2243_v31  ;;  %v2247_v37 = vmax.f32 %v2244_v34, %v2245_v35 }
 0x69e   : > { %v2248_v38 = vmax.f32 %v2246_v33, %v2247_v37 }
 0x6a0   : > { %v2249_v28 = vrot.slane %v2248_v38, 4 }
 0x6a2   : > { %v2250_v41 = vmax.f32 %v2248_v38, %v2249_v28 }
 0x6a4   : > { %v2251_v26 = vrot.slane %v2250_v41, 2 }
 0x6a6   : > { %v2252_v43 = vmax.f32 %v2250_v41, %v2251_v26 }
 0x6a8   : > { %v2253_v25 = vrot.slane %v2252_v43, 1 }
 0x6aa   : > { %v2254_v2 = vmax.f32 %v2252_v43, %v2253_v25 }
 0x6ac   : > { %v2255_v45 = vsub.f32 %v2238_v23, %v2254_v2  ;;  %v2256_v59 = vsub.f32 %v2239_v24, %v2254_v2  ;;  %v2257_v46 = vsub.f32 %v2240_v27, %v2254_v2  ;;  %v2258_v48 = vsub.f32 %v2241_v29, %v2254_v2 }
 0x6ae   : > { %v2259_v58 = vmul.f32 1.442695, %v2255_v45  ;;  %v2261_v47 = vmul.f32 1.442695, %v2256_v59  ;;  %v2263_v49 = vmul.f32 1.442695, %v2257_v46 }
 0x6af   : > { %v2265_v50 = vmul.f32 1.442695, %v2258_v48 }
 0x6b0   : > { %2848 = vpow2.f32 %v2259_v58 }
 0x6b1   : > { %2850 = vpow2.f32 %v2261_v47 }
 0x6b2   : > { %2852 = vpow2.f32 %v2263_v49 }
 0x6b3   : > { %2854 = vpow2.f32 %v2265_v50 }
 0x6bd   : > { %v2849_v51 = vpop.eup %2848 }
 0x6be   : > { %v2851_v52 = vpop.eup %2850  ;;  %v2267_v53 = vsel %vm1125_vm8, %v2849_v51, 0.0 }
 0x6bf   : > { %v2268_v54 = vsel %vm1125_vm8, %v2851_v52, 0.0  ;;  %v2853_v55 = vpop.eup %2852 }
 0x6c0   : > { %v2269_v56 = vadd.f32 %v2268_v54, %v2267_v53  ;;  %v2270_v60 = vsel %vm1125_vm8, %v2853_v55, 0.0  ;;  %v2855_v62 = vpop.eup %2854 }
 0x6c1   : > { %v2272_v0 = vsel %vm1125_vm8, %v2855_v62, 0.0 }
 0x6c2   : > { %v2271_v63 = vadd.f32 %v2270_v60, %v2269_v56 }
 0x6c4   : > { %v2273_v1 = vadd.f32 %v2272_v0, %v2271_v63 }
 0x6c6   : > { %v2274_v3 = vrot.slane %v2273_v1, 4 }
 0x6c8   : > { %v2275_v4 = vadd.f32 %v2274_v3, %v2273_v1 }
 0x6ca   : > { %v2276_v5 = vrot.slane %v2275_v4, 2 }
 0x6cc   : > { %v2277_v6 = vadd.f32 %v2276_v5, %v2275_v4 }
 0x6ce   : > { %v2278_v7 = vrot.slane %v2277_v6, 1 }
 0x6d0   : > { %v2279_v8 = vadd.f32 %v2278_v7, %v2277_v6 }
 0x6d2   : > { %2856 = vrcp.f32 %v2279_v8 }
 0x6df   : > { %v2857_v24 = vpop.eup %2856 }
 0x6e0   : > { %v2282_v34 = vmul.f32 %v2857_v24, %v2851_v52  ;;  %v2281_v37 = vmul.f32 %v2857_v24, %v2849_v51  ;;  %v2284_v26 = vmul.f32 %v2857_v24, %v2855_v62  ;;  %v2283_v59 = vmul.f32 %v2857_v24, %v2853_v55 }
 0x72a   : > { %v2705_v57 = vpop.f32.mrf.mxu1 }
 0x72b   : > { %v1876_v12 = vsel %vm1125_vm8, %v2705_v57, 0.0 }
 0x72c   : > { %v1735_v9 = vpop.f32.mrf.mxu1 }
 0x72d   : > { %v1875_v10 = vsel %vm1125_vm8, %v1735_v9, 0.0 }
 0x72e   : > { %v2708_v11 = vpop.f32.mrf.mxu1  ;;  %v1877_v13 = vadd.f32 %v1876_v12, %v1875_v10 }
 0x72f   : > { %v1880_v23 = vsel %vm1125_vm8, %v2708_v11, 0.0 }
 0x730   : > { %v1745_v14 = vpop.f32.mrf.mxu1 }
 0x731   : > { %v1878_v19 = vsel %vm1125_vm8, %v1745_v14, 0.0 }
 0x732   : > { %v1879_v20 = vadd.f32 %v1878_v19, %v1877_v13  ;;  %v2711_v21 = vpop.f32.mrf.mxu1 }
 0x734   : > { %v1881_v27 = vadd.f32 %v1880_v23, %v1879_v20  ;;  %v1755_v29 = vpop.f32.mrf.mxu1 }
 0x736   : > { %v1882_v30 = vrot.slane %v1881_v27, 4  ;;  %v2714_v31 = vpop.f32.mrf.mxu1 }
 0x738   : > { %v1883_v35 = vadd.f32 %v1882_v30, %v1881_v27  ;;  %v1765_v33 = vpop.f32.mrf.mxu1 }
 0x73a   : > { %v1884_v38 = vrot.slane %v1883_v35, 2  ;;  %v2759_v28 = vpop.f32.mrf.mxu1 }
 0x73b   : > { %v2286_v41 = vmul.f32 %v2759_v28, %v2282_v34 }
 0x73c   : > { %v1885_v43 = vadd.f32 %v1884_v38, %v1883_v35  ;;  %v2187_v25 = vpop.f32.mrf.mxu1 }
 0x73d   : > { %v2290_v2 = vadd.f32 %v2286_v41, %v3323_v36  ;;  %v2285_v45 = vmul.f32 %v2281_v37, %v2187_v25 }
 0x73e   : > { %v1886_v58 = vrot.slane %v1885_v43, 1  ;;  %v2762_v46 = vpop.f32.mrf.mxu1 }
 0x73f   : > { %2294 = vst.msk [vmem:[%s3064_s27 + $0x8] sm:$0xff] %vm1125_vm8, %v2290_v2  ;;  %v2289_v47 = vadd.f32 %v2285_v45, %v3328_v39  ;;  %v2288_v48 = vmul.f32 %v2762_v46, %v2284_v26 }
 0x740   : > { %v1887_v49 = vadd.f32 %v1886_v58, %v1885_v43  ;;  %v2197_v50 = vpop.f32.mrf.mxu1 }
 0x741   : > { %2293 = vst.msk [vmem:[%s3064_s27] sm:$0xff] %vm1125_vm8, %v2289_v47  ;;  %v2292_v51 = vadd.f32 %v2288_v48, %v3312_v22  ;;  %v2287_v52 = vmul.f32 %v2283_v59, %v2197_v50 }
 0x742   : > { %v1889_v53 = vmul.f32 %v2711_v21, %v1887_v49  ;;  %v1888_v36 = vmul.f32 %v1887_v49, %v1755_v29  ;;  %v1890_v54 = vmul.f32 %v1887_v49, %v1765_v33  ;;  %v1891_v60 = vmul.f32 %v2714_v31, %v1887_v49 }
 0x743   : > { %2296 = vst.msk [vmem:[%s3064_s27 + $0x18] sm:$0xff] %vm1125_vm8, %v2292_v51  ;;  %v2291_v55 = vadd.f32 %v2287_v52, %v3318_v32 }
 0x744   : > { %v1893_v56 = vsel %vm1125_vm8, %v1889_v53, 0.0  ;;  %v1892_v39 = vsel %vm1125_vm8, %v1888_v36, 0.0  ;;  %v1895_v63 = vsel %vm1125_vm8, %v1890_v54, 0.0  ;;  %v1897_v22 = vsel %vm1125_vm8, %v1891_v60, 0.0 }
 0x745   : > { %v1894_v62 = vadd.f32 %v1893_v56, %v1892_v39  ;;  %2295 = vst.msk [vmem:[%s3064_s27 + $0x10] sm:$0xff] %vm1125_vm8, %v2291_v55 }
 0x747   : > { %v1896_v0 = vadd.f32 %v1895_v63, %v1894_v62 }
 0x749   : > { %v1898_v1 = vadd.f32 %v1897_v22, %v1896_v0 }
 0x74b   : > { %v1899_v3 = vrot.slane %v1898_v1, 4 }
 0x74d   : > { %v1900_v4 = vadd.f32 %v1899_v3, %v1898_v1 }
 0x74f   : > { %v1901_v5 = vrot.slane %v1900_v4, 2 }
 0x751   : > { %v1902_v6 = vadd.f32 %v1901_v5, %v1900_v4 }
 0x753   : > { %v1903_v7 = vrot.slane %v1902_v6, 1 }
 0x755   : > { %v1904_v32 = vadd.f32 %v1903_v7, %v1902_v6 }
 0x757   : > { %v1905_v8 = vadd.f32 1e-09, %v1904_v32 }
 0x759   : > { %2858 = vrcp.f32 %v1905_v8 }
 0x766   : > { %v2859_v57 = vpop.eup %2858 }
 0x767   : > { %v1907_v9 = vmul.f32 %v2859_v57, %v1888_v36  ;;  %v1908_v10 = vmul.f32 %v2859_v57, %v1889_v53  ;;  %v1909_v11 = vmul.f32 %v2859_v57, %v1890_v54  ;;  %v1910_v12 = vmul.f32 %v2859_v57, %v1891_v60 }
 0x769   : > { %v1911_v13 = vsel %vm1125_vm8, %v1907_v9, -inf  ;;  %v1912_v14 = vsel %vm1125_vm8, %v1908_v10, -inf  ;;  %v1913_v19 = vsel %vm1125_vm8, %v1909_v11, -inf  ;;  %v1914_v20 = vsel %vm1125_vm8, %v1910_v12, -inf }
 0x76a   : > { %v1915_v21 = vmax.f32 %v1911_v13, %v1912_v14  ;;  %v1916_v23 = vmax.f32 %v1913_v19, %v1914_v20 }
 0x76c   : > { %v1917_v24 = vmax.f32 %v1915_v21, %v1916_v23 }
 0x76e   : > { %v1918_v27 = vrot.slane %v1917_v24, 4 }
 0x770   : > { %v1919_v29 = vmax.f32 %v1917_v24, %v1918_v27 }
 0x772   : > { %v1920_v30 = vrot.slane %v1919_v29, 2 }
 0x774   : > { %v1921_v31 = vmax.f32 %v1919_v29, %v1920_v30 }
 0x776   : > { %v1922_v34 = vrot.slane %v1921_v31, 1 }
 0x778   : > { %v1923_v35 = vmax.f32 %v1921_v31, %v1922_v34 }
 0x77a   : > { %v1924_v33 = vsub.f32 %v1907_v9, %v1923_v35  ;;  %v1925_v37 = vsub.f32 %v1908_v10, %v1923_v35  ;;  %v1926_v38 = vsub.f32 %v1909_v11, %v1923_v35  ;;  %v1927_v28 = vsub.f32 %v1910_v12, %v1923_v35 }
 0x77c   : > { %v1928_v41 = vmul.f32 1.442695, %v1924_v33  ;;  %v1930_v26 = vmul.f32 1.442695, %v1925_v37  ;;  %v1932_v43 = vmul.f32 1.442695, %v1926_v38 }
 0x77d   : > { %v1934_v25 = vmul.f32 1.442695, %v1927_v28 }
 0x77e   : > { %2860 = vpow2.f32 %v1928_v41 }
 0x77f   : > { %2862 = vpow2.f32 %v1930_v26 }
 0x780   : > { %2864 = vpow2.f32 %v1932_v43 }
 0x781   : > { %2866 = vpow2.f32 %v1934_v25 }
 0x78b   : > { %v2861_v2 = vpop.eup %2860 }
 0x78c   : > { %v2863_v45 = vpop.eup %2862  ;;  %v1936_v59 = vsel %vm1125_vm8, %v2861_v2, 0.0 }
 0x78d   : > { %v2865_v58 = vpop.eup %2864  ;;  %v1937_v46 = vsel %vm1125_vm8, %v2863_v45, 0.0 }
 0x78e   : > { %v2867_v47 = vpop.eup %2866  ;;  %v1938_v48 = vadd.f32 %v1937_v46, %v1936_v59  ;;  %v1939_v49 = vsel %vm1125_vm8, %v2865_v58, 0.0 }
 0x78f   : > { %v1941_v51 = vsel %vm1125_vm8, %v2867_v47, 0.0 }
 0x790   : > { %v1940_v50 = vadd.f32 %v1939_v49, %v1938_v48 }
 0x792   : > { %v1942_v52 = vadd.f32 %v1941_v51, %v1940_v50 }
 0x794   : > { %v1943_v53 = vrot.slane %v1942_v52, 4 }
 0x796   : > { %v1944_v36 = vadd.f32 %v1943_v53, %v1942_v52 }
 0x798   : > { %v1945_v54 = vrot.slane %v1944_v36, 2 }
 0x79a   : > { %v1946_v55 = vadd.f32 %v1945_v54, %v1944_v36 }
 0x79c   : > { %v1947_v56 = vrot.slane %v1946_v55, 1 }
 0x79e   : > { %v1948_v39 = vadd.f32 %v1947_v56, %v1946_v55 }
 0x7a0   : > { %2868 = vrcp.f32 %v1948_v39 }
 0x7ad   : > { %v2869_v60 = vpop.eup %2868 }
 0x7ae   : > { %v1950_v62 = vmul.f32 %v2869_v60, %v2861_v2  ;;  %v1951_v63 = vmul.f32 %v2869_v60, %v2863_v45  ;;  %v1952_v0 = vmul.f32 %v2869_v60, %v2865_v58  ;;  %v1953_v22 = vmul.f32 %v2869_v60, %v2867_v47 }
 0x7b0   : > { %v1954_v1 = vmul.f32 %v1950_v62, %v3304_v16  ;;  %v1955_v3 = vmul.f32 %v3302_v15, %v1951_v63  ;;  %v1956_v4 = vmul.f32 %v1952_v0, %v3308_v18  ;;  %v1957_v5 = vmul.f32 %v3306_v17, %v1953_v22 }
 0x7b2   : > { %v1958_v6 = vadd.f32 %v1954_v1, %v3242_v61  ;;  %v1959_v7 = vadd.f32 %v1955_v3, %v3235_v44  ;;  %v1960_v32 = vadd.f32 %v1956_v4, %v3230_v42  ;;  %v1961_v8 = vadd.f32 %v1957_v5, %v3227_v40 }
 0x7b4   : > { %1962 = vst.msk [vmem:[%s3058_s18] sm:$0xff] %vm1125_vm8, %v1958_v6  ;;  %1963 = vst.msk [vmem:[%s3058_s18 + $0x8] sm:$0xff] %vm1125_vm8, %v1959_v7 }
 0x7b5   : > { %1964 = vst.msk [vmem:[%s3058_s18 + $0x10] sm:$0xff] %vm1125_vm8, %v1960_v32  ;;  %1965 = vst.msk [vmem:[%s3058_s18 + $0x18] sm:$0xff] %vm1125_vm8, %v1961_v8 }
 0x7b6 PF: > { %s27_s25 = sadd.s32 1, %s2908_s25   ;;  %s3488_s22 = sld [smem:[#allocation4_spill]] }
 0x7b7   : > { %p24_p9 = scmp.ge.s32.totalorder %s27_s25, 10   ;;  %s3489_s27 = sld [smem:[#allocation5_spill]] }
 0x7b8   : > { %s3490_s24 = sld [smem:[#allocation6_spill]]  ;;  %s3491_s21 = smov %s2900_s23 }
 0x7b9   :  { %26 = sbr.rel (!%p24_p9) target bundleno = 6 (0x6), region = 148 }
 0x7bd   : > { %s3492_s23 = smov %s3489_s27 }

</bundles_post_ra>
